<compile_context>
chip_gen: v6e
topology: v6e:2x2x1
jax: 0.10.0
libtpu: 0.0.40
codegen_flags: <defaults>
</compile_context>

<pallas_src>
import functools

import jax
import jax.numpy as jnp
import numpy as np
from jax.experimental import pallas as pl
from jax.experimental.pallas import tpu as pltpu

EPS = 1e-5
K_PARTIAL = 4  # PcMixedOp.k
BASIC_OPS = ["none", "skip_connect", "avg_pool_3x3", "sep_conv_3x3"]


# ---------------------------------------------------------------------------
# Fused cell kernel.  All tensors are laid out (channels, N*H*W) so the last
# (lane) dimension is N*H*W = 128 -> lane-dense loads/stores, BN reductions
# along lanes, and 3x3 spatial taps become lane rolls (masks pre-folded into
# the weight tables / pool constants).
# ---------------------------------------------------------------------------
def _cell_kernel(sample_ref, sample2_ref, x01_ref, wpre_ref, poolc_ref,
                 perm_ref, *node_and_out_refs, N, C, H, W, n_nodes,
                 multiplier, k):
    out_ref = node_and_out_refs[-1]
    node_refs = node_and_out_refs[:-1]      # per node: (dw_table, pw_blockdiag)
    P = N * H * W
    cq = C // k

    def lane_shift(x, s):
        # r[:, p] = x[:, p + s]; circular wrap is killed by the boundary masks
        # that are pre-folded into the dw weight tables / pool masks.
        if s == 0:
            return x
        return pltpu.roll(x, shift=(-s) % P, axis=1)

    def bn(y):
        # BatchNorm2d(affine=False), training-mode batch stats over (N,H,W):
        # single pass, var = E[y^2] - mean^2, biased variance, eps=1e-5.
        mean = jnp.mean(y, axis=1, keepdims=True)
        mean_sq = jnp.mean(y * y, axis=1, keepdims=True)
        var = mean_sq - mean * mean
        return (y - mean) * jax.lax.rsqrt(var + EPS)

    # separable avg_pool_3x3 constants (precomputed host-side):
    # rows = [left-valid, right-valid, up-valid, down-valid, 1/count]
    m_left = poolc_ref[0:1, :]
    m_right = poolc_ref[1:2, :]
    m_up = poolc_ref[2:3, :]
    m_down = poolc_ref[3:4, :]
    cnt_inv = poolc_ref[4:5, :]

    def avg_pool3(x):
        # AvgPool2d(3, 1, 1, count_include_pad=False), separable: 4 rolls.
        h = x + lane_shift(x, -1) * m_left + lane_shift(x, 1) * m_right
        v = h + lane_shift(h, -W) * m_up + lane_shift(h, W) * m_down
        return v * cnt_inv

    def dw3x3(x, dw_ref, stage):
        # depthwise 3x3, stride 1, pad 1 on the edge-stacked slab.
        # dw_ref[stage, t] is (rows, P): per-channel tap weight with the
        # per-tap boundary mask already folded in (lane-ready, no (c,1) slices).
        acc = dw_ref[stage, 4] * x                      # centre tap (shift 0)
        for t in range(9):
            if t == 4:
                continue
            dy, dx = t // 3 - 1, t % 3 - 1
            acc = acc + dw_ref[stage, t] * lane_shift(x, dy * W + dx)
        return acc

    def sep_conv(x, dw_ref, pw_ref):
        # SepConv: (ReLU -> dw3x3 -> pw1x1 -> BN) x 2, affine=False.  The
        # pointwise 1x1 convs are block-diagonal MXU matmuls over the stacked
        # slab (bf16 inputs, f32 accumulation).
        y = dw3x3(jnp.maximum(x, 0.0), dw_ref, 0)
        y = bn(jnp.dot(pw_ref[0], y.astype(jnp.bfloat16),
                       preferred_element_type=jnp.float32))
        y = dw3x3(jnp.maximum(y, 0.0), dw_ref, 1)
        y = bn(jnp.dot(pw_ref[1], y.astype(jnp.bfloat16),
                       preferred_element_type=jnp.float32))
        return y

    # --- both preprocs fused: ReLU -> one block-diagonal 1x1 conv (MXU) -> BN
    xact = jnp.maximum(x01_ref[...], 0.0).astype(jnp.bfloat16)
    ypre = bn(jnp.dot(wpre_ref[...], xact, preferred_element_type=jnp.float32))
    states = [ypre[:C, :], ypre[C:, :]]

    edge = 0
    for node in range(n_nodes):
        ne = len(states)                    # number of edges into this node
        dw_ref = node_refs[2 * node]
        pw_ref = node_refs[2 * node + 1]

        # Stack the cq partial channels of every incoming state into one
        # sublane-dense slab; every heavy op runs once per node on the slab.
        xslab = jnp.concatenate([s[:cq, :] for s in states], axis=0)

        ap_slab = avg_pool3(xslab)
        sep_slab = sep_conv(xslab, dw_ref, pw_ref)

        part_sum = None   # beta*alpha weighted edge sum over active channels
        rest_sum = None   # beta weighted edge sum over untouched channels
        for j in range(ne):
            ww = sample2_ref[edge]              # beta (edge) weight
            w_skip = ww * sample_ref[edge, 1]   # beta*alpha as sreg products
            w_avg = ww * sample_ref[edge, 2]
            w_sep = ww * sample_ref[edge, 3]
            # 'none' (op index 0) weights an identically-zero tensor ->
            # dropped statically (numerically identical to the reference sum).
            lo = j * cq
            part = (w_skip * xslab[lo:lo + cq, :]
                    + w_avg * ap_slab[lo:lo + cq, :]
                    + w_sep * sep_slab[lo:lo + cq, :])
            rest = ww * states[j][cq:, :]
            part_sum = part if part_sum is None else part_sum + part
            rest_sum = rest if rest_sum is None else rest_sum + rest
            edge += 1

        # concat(part, rest) + channel_shuffle(groups=k).  The shuffle is a
        # fixed channel permutation, hoisted outside the (linear) edge sum and
        # executed as an exact permutation matmul on the otherwise idle MXU.
        full = jnp.concatenate([part_sum, rest_sum], axis=0)
        states.append(jnp.dot(perm_ref[...], full,
                              preferred_element_type=jnp.float32))

    # cell output: last `multiplier` node states written straight into out_ref
    for i, s in enumerate(states[-multiplier:]):
        out_ref[i * C:(i + 1) * C, :] = s


# ---------------------------------------------------------------------------
# Host-side (trace-time) constants: 3x3 boundary masks, separable-pool masks
# and 1/count, and the channel-shuffle permutation matrix.
# ---------------------------------------------------------------------------
def _spatial_consts(N, H, W):
    P = N * H * W
    pos = np.arange(P)
    yy = (pos % (H * W)) // W
    xx = pos % W
    masks9 = np.zeros((9, P), np.float32)
    for t in range(9):
        dy, dx = t // 3 - 1, t % 3 - 1
        ok = (yy + dy >= 0) & (yy + dy < H) & (xx + dx >= 0) & (xx + dx < W)
        masks9[t] = ok.astype(np.float32)
    m_left = (xx >= 1).astype(np.float32)
    m_right = (xx <= W - 2).astype(np.float32)
    m_up = (yy >= 1).astype(np.float32)
    m_down = (yy <= H - 2).astype(np.float32)
    cnt = (1.0 + m_left + m_right) * (1.0 + m_up + m_down)
    poolc = np.stack([m_left, m_right, m_up, m_down,
                      1.0 / cnt]).astype(np.float32)
    return masks9, poolc


def _shuffle_perm(C, k):
    # channel_shuffle(x, groups=k): out[o] = in[(o % k) * (C//k) + o // k]
    cq = C // k
    perm = np.zeros((C, C), np.float32)
    for o in range(C):
        perm[o, (o % k) * cq + o // k] = 1.0
    return perm


def _nchw_to_cp(x):
    n, c, h, w = x.shape
    return jnp.transpose(x, (1, 0, 2, 3)).reshape(c, n * h * w).astype(jnp.float32)


# ---------------------------------------------------------------------------
# Wrapper: NCHW <-> (channels, N*H*W) layout plumbing, weight packing
# (block-diagonal MXU weights, mask-folded lane-ready dw tables) and the
# single pallas_call.
# ---------------------------------------------------------------------------
@functools.partial(jax.jit, static_argnames=("n_nodes", "multiplier"))
def pc_darts_cell_forward(s0, s1, sample, sample2, params, *, n_nodes, multiplier):
    N, C, H, W = s0.shape
    P = N * H * W
    k = K_PARTIAL
    cq = C // k

    masks9, poolc = _spatial_consts(N, H, W)
    perm = _shuffle_perm(C, k)

    # both preproc inputs stacked along channels + block-diag preproc weight
    x01 = jnp.concatenate([_nchw_to_cp(s0), _nchw_to_cp(s1)], axis=0)
    w_pre = jnp.zeros((2 * C, 2 * C), jnp.float32)
    w_pre = w_pre.at[:C, :C].set(params["preproc0_w"])
    w_pre = w_pre.at[C:, C:].set(params["preproc1_w"])
    w_pre = w_pre.astype(jnp.bfloat16)

    # per node: edge-stacked depthwise tables (boundary mask folded in,
    # lane-broadcast) and block-diagonal pointwise weights (bf16 for the MXU)
    node_args = []
    base = 0
    for node in range(n_nodes):
        ne = 2 + node
        cs = ne * cq
        d = params["dw"][base:base + ne]                       # (ne, 2, cq, 9)
        d = jnp.transpose(d, (1, 3, 0, 2)).reshape(2, 9, cs)   # (2, 9, cs)
        dw_b = d[:, :, :, None] * jnp.asarray(masks9)[None, :, None, :]
        pwn = jnp.zeros((2, cs, cs), jnp.float32)
        pe = params["pw"][base:base + ne]                      # (ne, 2, cq, cq)
        for j in range(ne):
            pwn = pwn.at[:, j * cq:(j + 1) * cq, j * cq:(j + 1) * cq].set(pe[j])
        node_args += [dw_b.astype(jnp.float32), pwn.astype(jnp.bfloat16)]
        base += ne

    vmem = pl.BlockSpec(memory_space=pltpu.MemorySpace.VMEM)
    smem = pl.BlockSpec(memory_space=pltpu.MemorySpace.SMEM)

    kernel = functools.partial(
        _cell_kernel, N=N, C=C, H=H, W=W,
        n_nodes=n_nodes, multiplier=multiplier, k=k)

    out_cp = pl.pallas_call(
        kernel,
        out_shape=jax.ShapeDtypeStruct((multiplier * C, P), jnp.float32),
        in_specs=[smem, smem, vmem, vmem, vmem, vmem] + [vmem] * (2 * n_nodes),
        out_specs=vmem,
    )(sample.astype(jnp.float32), sample2.astype(jnp.float32),
      x01, w_pre, jnp.asarray(poolc), jnp.asarray(perm), *node_args)

    # (multiplier*C, N*H*W) -> NCHW
    return jnp.transpose(out_cp.reshape(multiplier * C, N, H, W), (1, 0, 2, 3))


def init_params(key, C, n_nodes, k=K_PARTIAL):
    cq = C // k
    n_edges = sum(2 + i for i in range(n_nodes))
    k0, k1, k2, k3 = jax.random.split(key, 4)
    return {
        # preproc 1x1 conv weights stored (Cout, Cin): kernel does y = W @ x
        "preproc0_w": 0.2 * jax.random.normal(k0, (C, C), jnp.float32),
        "preproc1_w": 0.2 * jax.random.normal(k1, (C, C), jnp.float32),
        # per edge: two depthwise 3x3 convs, each (cq channels, 9 taps)
        "dw": 0.2 * jax.random.normal(k2, (n_edges, 2, cq, 9), jnp.float32),
        # per edge: two pointwise 1x1 convs, each (cout=cq, cin=cq)
        "pw": 0.2 * jax.random.normal(k3, (n_edges, 2, cq, cq), jnp.float32),
    }


def darts_weight_groups(beta, n_nodes):
    # per-node softmax over the beta weights of that node's incoming edges,
    # as done by the PC-DARTS controller / print_alphas.
    groups, start, n = [], 0, 2
    for _ in range(n_nodes):
        groups.append(jax.nn.softmax(beta[start:start + n]))
        start += n
        n += 1
    return jnp.concatenate(groups)


if __name__ == "__main__":
    N, C, H, W = 2, 16, 8, 8          # N*H*W = 128 -> one full lane tile
    n_nodes, multiplier = 2, 2
    n_edges = sum(2 + i for i in range(n_nodes))  # 5
    n_ops = len(BASIC_OPS)                        # 4

    key = jax.random.PRNGKey(0)
    key, ks0, ks1, ka, kb, kp = jax.random.split(key, 6)
    s0 = jax.random.normal(ks0, (N, C, H, W), jnp.float32)
    s1 = jax.random.normal(ks1, (N, C, H, W), jnp.float32)

    # architecture weights: softmax(alpha) over ops per edge,
    # per-node softmax(beta) over incoming edges (as in the controller).
    sample = jax.nn.softmax(
        jax.random.normal(ka, (n_edges, n_ops), jnp.float32), axis=-1)
    beta = jax.random.normal(kb, (n_edges,), jnp.float32)
    sample2 = darts_weight_groups(beta, n_nodes)

    params = init_params(kp, C, n_nodes)

    out = pc_darts_cell_forward(s0, s1, sample, sample2, params,
                                n_nodes=n_nodes, multiplier=multiplier)
    out = jax.block_until_ready(out)
    assert out.shape == (N, multiplier * C, H, W), out.shape
    assert bool(jnp.all(jnp.isfinite(out)))
    print("KERNEL_OK")
</pallas_src>

<mosaic_0001>
module attributes {stable_mosaic.version = 11 : i64} {
  func.func @_cell_kernel(%arg0: memref<5x4xf32, #tpu.memory_space<smem>>, %arg1: memref<5xf32, #tpu.memory_space<smem>>, %arg2: memref<32x128xf32, #tpu.memory_space<vmem>>, %arg3: memref<32x32xbf16, #tpu.memory_space<vmem>>, %arg4: memref<5x128xf32, #tpu.memory_space<vmem>>, %arg5: memref<16x16xf32, #tpu.memory_space<vmem>>, %arg6: memref<2x9x8x128xf32, #tpu.memory_space<vmem>>, %arg7: memref<2x8x8xbf16, #tpu.memory_space<vmem>>, %arg8: memref<2x9x12x128xf32, #tpu.memory_space<vmem>>, %arg9: memref<2x12x12xbf16, #tpu.memory_space<vmem>>, %arg10: memref<32x128xf32, #tpu.memory_space<vmem>>) attributes {dimension_semantics = [], scalar_prefetch = 0 : i64, scratch_operands = 0 : i64, tpu.core_type = #tpu.core_type<tc>} {
    %c0 = arith.constant 0 : index
    %c0_0 = arith.constant 0 : index
    %0 = vector.load %arg4[%c0, %c0_0] : memref<5x128xf32, #tpu.memory_space<vmem>>, vector<1x128xf32>
    %c1 = arith.constant 1 : index
    %c0_1 = arith.constant 0 : index
    %1 = vector.load %arg4[%c1, %c0_1] : memref<5x128xf32, #tpu.memory_space<vmem>>, vector<1x128xf32>
    %c2 = arith.constant 2 : index
    %c0_2 = arith.constant 0 : index
    %2 = vector.load %arg4[%c2, %c0_2] : memref<5x128xf32, #tpu.memory_space<vmem>>, vector<1x128xf32>
    %c3 = arith.constant 3 : index
    %c0_3 = arith.constant 0 : index
    %3 = vector.load %arg4[%c3, %c0_3] : memref<5x128xf32, #tpu.memory_space<vmem>>, vector<1x128xf32>
    %c4 = arith.constant 4 : index
    %c0_4 = arith.constant 0 : index
    %4 = vector.load %arg4[%c4, %c0_4] : memref<5x128xf32, #tpu.memory_space<vmem>>, vector<1x128xf32>
    %c0_5 = arith.constant 0 : index
    %c0_6 = arith.constant 0 : index
    %5 = vector.load %arg2[%c0_5, %c0_6] : memref<32x128xf32, #tpu.memory_space<vmem>>, vector<32x128xf32>
    %cst = arith.constant 0.000000e+00 : f32
    %6 = vector.broadcast %cst : f32 to vector<32x128xf32>
    %7 = arith.maximumf %5, %6 : vector<32x128xf32>
    %8 = arith.truncf %7 : vector<32x128xf32> to vector<32x128xbf16>
    %c0_7 = arith.constant 0 : index
    %c0_8 = arith.constant 0 : index
    %9 = vector.load %arg3[%c0_7, %c0_8] : memref<32x32xbf16, #tpu.memory_space<vmem>>, vector<32x32xbf16>
    %cst_9 = arith.constant dense<0.000000e+00> : vector<32x128xf32>
    %10 = tpu.matmul %9, %8, %cst_9 {dimension_numbers = #tpu.dot_dimension_numbers<[1], [0], [0], [1], [0, 0, 1, 1], [], []>} : vector<32x32xbf16>, vector<32x128xbf16>, vector<32x128xf32> -> vector<32x128xf32>
    %cst_10 = arith.constant dense<0.000000e+00> : vector<32xf32>
    %11 = vector.multi_reduction <add>, %10, %cst_10 [1] : vector<32x128xf32> to vector<32xf32>
    %12 = vector.shape_cast %11 : vector<32xf32> to vector<32x1xf32>
    %cst_11 = arith.constant 1.280000e+02 : f32
    %13 = vector.broadcast %cst_11 : f32 to vector<32x1xf32>
    %14 = arith.divf %12, %13 : vector<32x1xf32>
    %15 = arith.mulf %10, %10 : vector<32x128xf32>
    %cst_12 = arith.constant dense<0.000000e+00> : vector<32xf32>
    %16 = vector.multi_reduction <add>, %15, %cst_12 [1] : vector<32x128xf32> to vector<32xf32>
    %17 = vector.shape_cast %16 : vector<32xf32> to vector<32x1xf32>
    %cst_13 = arith.constant 1.280000e+02 : f32
    %18 = vector.broadcast %cst_13 : f32 to vector<32x1xf32>
    %19 = arith.divf %17, %18 : vector<32x1xf32>
    %20 = arith.mulf %14, %14 : vector<32x1xf32>
    %21 = arith.subf %19, %20 : vector<32x1xf32>
    %22 = vector.broadcast %14 : vector<32x1xf32> to vector<32x128xf32>
    %23 = arith.subf %10, %22 : vector<32x128xf32>
    %cst_14 = arith.constant 9.99999974E-6 : f32
    %24 = vector.broadcast %cst_14 : f32 to vector<32x1xf32>
    %25 = arith.addf %21, %24 : vector<32x1xf32>
    %26 = math.rsqrt %25 : vector<32x1xf32>
    %27 = vector.broadcast %26 : vector<32x1xf32> to vector<32x128xf32>
    %28 = arith.mulf %23, %27 : vector<32x128xf32>
    %29 = vector.extract_strided_slice %28 {offsets = [0, 0], sizes = [16, 128], strides = [1, 1]} : vector<32x128xf32> to vector<16x128xf32>
    %30 = vector.extract_strided_slice %28 {offsets = [16, 0], sizes = [16, 128], strides = [1, 1]} : vector<32x128xf32> to vector<16x128xf32>
    %31 = vector.extract_strided_slice %29 {offsets = [0, 0], sizes = [4, 128], strides = [1, 1]} : vector<16x128xf32> to vector<4x128xf32>
    %32 = vector.extract_strided_slice %30 {offsets = [0, 0], sizes = [4, 128], strides = [1, 1]} : vector<16x128xf32> to vector<4x128xf32>
    %33 = tpu.concatenate %31, %32 in 0 : vector<4x128xf32>, vector<4x128xf32> -> vector<8x128xf32>
    %c1_i32 = arith.constant 1 : i32
    %34 = tpu.dynamic_rotate %33 by %c1_i32 dim 1 : vector<8x128xf32>, i32 -> vector<8x128xf32>
    %35 = vector.broadcast %0 : vector<1x128xf32> to vector<8x128xf32>
    %36 = arith.mulf %34, %35 : vector<8x128xf32>
    %37 = arith.addf %33, %36 : vector<8x128xf32>
    %c127_i32 = arith.constant 127 : i32
    %38 = tpu.dynamic_rotate %33 by %c127_i32 dim 1 : vector<8x128xf32>, i32 -> vector<8x128xf32>
    %39 = vector.broadcast %1 : vector<1x128xf32> to vector<8x128xf32>
    %40 = arith.mulf %38, %39 : vector<8x128xf32>
    %41 = arith.addf %37, %40 : vector<8x128xf32>
    %c8_i32 = arith.constant 8 : i32
    %42 = tpu.dynamic_rotate %41 by %c8_i32 dim 1 : vector<8x128xf32>, i32 -> vector<8x128xf32>
    %43 = vector.broadcast %2 : vector<1x128xf32> to vector<8x128xf32>
    %44 = arith.mulf %42, %43 : vector<8x128xf32>
    %45 = arith.addf %41, %44 : vector<8x128xf32>
    %c120_i32 = arith.constant 120 : i32
    %46 = tpu.dynamic_rotate %41 by %c120_i32 dim 1 : vector<8x128xf32>, i32 -> vector<8x128xf32>
    %47 = vector.broadcast %3 : vector<1x128xf32> to vector<8x128xf32>
    %48 = arith.mulf %46, %47 : vector<8x128xf32>
    %49 = arith.addf %45, %48 : vector<8x128xf32>
    %50 = vector.broadcast %4 : vector<1x128xf32> to vector<8x128xf32>
    %51 = arith.mulf %49, %50 : vector<8x128xf32>
    %cst_15 = arith.constant 0.000000e+00 : f32
    %52 = vector.broadcast %cst_15 : f32 to vector<8x128xf32>
    %53 = arith.maximumf %33, %52 : vector<8x128xf32>
    %c0_16 = arith.constant 0 : index
    %c4_17 = arith.constant 4 : index
    %c0_18 = arith.constant 0 : index
    %c0_19 = arith.constant 0 : index
    %54 = vector.load %arg6[%c0_16, %c4_17, %c0_18, %c0_19] : memref<2x9x8x128xf32, #tpu.memory_space<vmem>>, vector<1x1x8x128xf32>
    %55 = vector.shape_cast %54 : vector<1x1x8x128xf32> to vector<8x128xf32>
    %56 = arith.mulf %55, %53 : vector<8x128xf32>
    %c0_20 = arith.constant 0 : index
    %c0_21 = arith.constant 0 : index
    %c0_22 = arith.constant 0 : index
    %c0_23 = arith.constant 0 : index
    %57 = vector.load %arg6[%c0_20, %c0_21, %c0_22, %c0_23] : memref<2x9x8x128xf32, #tpu.memory_space<vmem>>, vector<1x1x8x128xf32>
    %58 = vector.shape_cast %57 : vector<1x1x8x128xf32> to vector<8x128xf32>
    %c9_i32 = arith.constant 9 : i32
    %59 = tpu.dynamic_rotate %53 by %c9_i32 dim 1 : vector<8x128xf32>, i32 -> vector<8x128xf32>
    %60 = arith.mulf %58, %59 : vector<8x128xf32>
    %61 = arith.addf %56, %60 : vector<8x128xf32>
    %c0_24 = arith.constant 0 : index
    %c1_25 = arith.constant 1 : index
    %c0_26 = arith.constant 0 : index
    %c0_27 = arith.constant 0 : index
    %62 = vector.load %arg6[%c0_24, %c1_25, %c0_26, %c0_27] : memref<2x9x8x128xf32, #tpu.memory_space<vmem>>, vector<1x1x8x128xf32>
    %63 = vector.shape_cast %62 : vector<1x1x8x128xf32> to vector<8x128xf32>
    %c8_i32_28 = arith.constant 8 : i32
    %64 = tpu.dynamic_rotate %53 by %c8_i32_28 dim 1 : vector<8x128xf32>, i32 -> vector<8x128xf32>
    %65 = arith.mulf %63, %64 : vector<8x128xf32>
    %66 = arith.addf %61, %65 : vector<8x128xf32>
    %c0_29 = arith.constant 0 : index
    %c2_30 = arith.constant 2 : index
    %c0_31 = arith.constant 0 : index
    %c0_32 = arith.constant 0 : index
    %67 = vector.load %arg6[%c0_29, %c2_30, %c0_31, %c0_32] : memref<2x9x8x128xf32, #tpu.memory_space<vmem>>, vector<1x1x8x128xf32>
    %68 = vector.shape_cast %67 : vector<1x1x8x128xf32> to vector<8x128xf32>
    %c7_i32 = arith.constant 7 : i32
    %69 = tpu.dynamic_rotate %53 by %c7_i32 dim 1 : vector<8x128xf32>, i32 -> vector<8x128xf32>
    %70 = arith.mulf %68, %69 : vector<8x128xf32>
    %71 = arith.addf %66, %70 : vector<8x128xf32>
    %c0_33 = arith.constant 0 : index
    %c3_34 = arith.constant 3 : index
    %c0_35 = arith.constant 0 : index
    %c0_36 = arith.constant 0 : index
    %72 = vector.load %arg6[%c0_33, %c3_34, %c0_35, %c0_36] : memref<2x9x8x128xf32, #tpu.memory_space<vmem>>, vector<1x1x8x128xf32>
    %73 = vector.shape_cast %72 : vector<1x1x8x128xf32> to vector<8x128xf32>
    %c1_i32_37 = arith.constant 1 : i32
    %74 = tpu.dynamic_rotate %53 by %c1_i32_37 dim 1 : vector<8x128xf32>, i32 -> vector<8x128xf32>
    %75 = arith.mulf %73, %74 : vector<8x128xf32>
    %76 = arith.addf %71, %75 : vector<8x128xf32>
    %c0_38 = arith.constant 0 : index
    %c5 = arith.constant 5 : index
    %c0_39 = arith.constant 0 : index
    %c0_40 = arith.constant 0 : index
    %77 = vector.load %arg6[%c0_38, %c5, %c0_39, %c0_40] : memref<2x9x8x128xf32, #tpu.memory_space<vmem>>, vector<1x1x8x128xf32>
    %78 = vector.shape_cast %77 : vector<1x1x8x128xf32> to vector<8x128xf32>
    %c127_i32_41 = arith.constant 127 : i32
    %79 = tpu.dynamic_rotate %53 by %c127_i32_41 dim 1 : vector<8x128xf32>, i32 -> vector<8x128xf32>
    %80 = arith.mulf %78, %79 : vector<8x128xf32>
    %81 = arith.addf %76, %80 : vector<8x128xf32>
    %c0_42 = arith.constant 0 : index
    %c6 = arith.constant 6 : index
    %c0_43 = arith.constant 0 : index
    %c0_44 = arith.constant 0 : index
    %82 = vector.load %arg6[%c0_42, %c6, %c0_43, %c0_44] : memref<2x9x8x128xf32, #tpu.memory_space<vmem>>, vector<1x1x8x128xf32>
    %83 = vector.shape_cast %82 : vector<1x1x8x128xf32> to vector<8x128xf32>
    %c121_i32 = arith.constant 121 : i32
    %84 = tpu.dynamic_rotate %53 by %c121_i32 dim 1 : vector<8x128xf32>, i32 -> vector<8x128xf32>
    %85 = arith.mulf %83, %84 : vector<8x128xf32>
    %86 = arith.addf %81, %85 : vector<8x128xf32>
    %c0_45 = arith.constant 0 : index
    %c7 = arith.constant 7 : index
    %c0_46 = arith.constant 0 : index
    %c0_47 = arith.constant 0 : index
    %87 = vector.load %arg6[%c0_45, %c7, %c0_46, %c0_47] : memref<2x9x8x128xf32, #tpu.memory_space<vmem>>, vector<1x1x8x128xf32>
    %88 = vector.shape_cast %87 : vector<1x1x8x128xf32> to vector<8x128xf32>
    %c120_i32_48 = arith.constant 120 : i32
    %89 = tpu.dynamic_rotate %53 by %c120_i32_48 dim 1 : vector<8x128xf32>, i32 -> vector<8x128xf32>
    %90 = arith.mulf %88, %89 : vector<8x128xf32>
    %91 = arith.addf %86, %90 : vector<8x128xf32>
    %c0_49 = arith.constant 0 : index
    %c8 = arith.constant 8 : index
    %c0_50 = arith.constant 0 : index
    %c0_51 = arith.constant 0 : index
    %92 = vector.load %arg6[%c0_49, %c8, %c0_50, %c0_51] : memref<2x9x8x128xf32, #tpu.memory_space<vmem>>, vector<1x1x8x128xf32>
    %93 = vector.shape_cast %92 : vector<1x1x8x128xf32> to vector<8x128xf32>
    %c119_i32 = arith.constant 119 : i32
    %94 = tpu.dynamic_rotate %53 by %c119_i32 dim 1 : vector<8x128xf32>, i32 -> vector<8x128xf32>
    %95 = arith.mulf %93, %94 : vector<8x128xf32>
    %96 = arith.addf %91, %95 : vector<8x128xf32>
    %c0_52 = arith.constant 0 : index
    %c0_53 = arith.constant 0 : index
    %c0_54 = arith.constant 0 : index
    %97 = vector.load %arg7[%c0_52, %c0_53, %c0_54] : memref<2x8x8xbf16, #tpu.memory_space<vmem>>, vector<1x8x8xbf16>
    %98 = vector.shape_cast %97 : vector<1x8x8xbf16> to vector<8x8xbf16>
    %99 = arith.truncf %96 : vector<8x128xf32> to vector<8x128xbf16>
    %cst_55 = arith.constant dense<0.000000e+00> : vector<8x128xf32>
    %100 = tpu.matmul %98, %99, %cst_55 {dimension_numbers = #tpu.dot_dimension_numbers<[1], [0], [0], [1], [0, 0, 1, 1], [], []>} : vector<8x8xbf16>, vector<8x128xbf16>, vector<8x128xf32> -> vector<8x128xf32>
    %cst_56 = arith.constant dense<0.000000e+00> : vector<8xf32>
    %101 = vector.multi_reduction <add>, %100, %cst_56 [1] : vector<8x128xf32> to vector<8xf32>
    %102 = vector.shape_cast %101 : vector<8xf32> to vector<8x1xf32>
    %cst_57 = arith.constant 1.280000e+02 : f32
    %103 = vector.broadcast %cst_57 : f32 to vector<8x1xf32>
    %104 = arith.divf %102, %103 : vector<8x1xf32>
    %105 = arith.mulf %100, %100 : vector<8x128xf32>
    %cst_58 = arith.constant dense<0.000000e+00> : vector<8xf32>
    %106 = vector.multi_reduction <add>, %105, %cst_58 [1] : vector<8x128xf32> to vector<8xf32>
    %107 = vector.shape_cast %106 : vector<8xf32> to vector<8x1xf32>
    %cst_59 = arith.constant 1.280000e+02 : f32
    %108 = vector.broadcast %cst_59 : f32 to vector<8x1xf32>
    %109 = arith.divf %107, %108 : vector<8x1xf32>
    %110 = arith.mulf %104, %104 : vector<8x1xf32>
    %111 = arith.subf %109, %110 : vector<8x1xf32>
    %112 = vector.broadcast %104 : vector<8x1xf32> to vector<8x128xf32>
    %113 = arith.subf %100, %112 : vector<8x128xf32>
    %cst_60 = arith.constant 9.99999974E-6 : f32
    %114 = vector.broadcast %cst_60 : f32 to vector<8x1xf32>
    %115 = arith.addf %111, %114 : vector<8x1xf32>
    %116 = math.rsqrt %115 : vector<8x1xf32>
    %117 = vector.broadcast %116 : vector<8x1xf32> to vector<8x128xf32>
    %118 = arith.mulf %113, %117 : vector<8x128xf32>
    %cst_61 = arith.constant 0.000000e+00 : f32
    %119 = vector.broadcast %cst_61 : f32 to vector<8x128xf32>
    %120 = arith.maximumf %118, %119 : vector<8x128xf32>
    %c1_62 = arith.constant 1 : index
    %c4_63 = arith.constant 4 : index
    %c0_64 = arith.constant 0 : index
    %c0_65 = arith.constant 0 : index
    %121 = vector.load %arg6[%c1_62, %c4_63, %c0_64, %c0_65] : memref<2x9x8x128xf32, #tpu.memory_space<vmem>>, vector<1x1x8x128xf32>
    %122 = vector.shape_cast %121 : vector<1x1x8x128xf32> to vector<8x128xf32>
    %123 = arith.mulf %122, %120 : vector<8x128xf32>
    %c1_66 = arith.constant 1 : index
    %c0_67 = arith.constant 0 : index
    %c0_68 = arith.constant 0 : index
    %c0_69 = arith.constant 0 : index
    %124 = vector.load %arg6[%c1_66, %c0_67, %c0_68, %c0_69] : memref<2x9x8x128xf32, #tpu.memory_space<vmem>>, vector<1x1x8x128xf32>
    %125 = vector.shape_cast %124 : vector<1x1x8x128xf32> to vector<8x128xf32>
    %c9_i32_70 = arith.constant 9 : i32
    %126 = tpu.dynamic_rotate %120 by %c9_i32_70 dim 1 : vector<8x128xf32>, i32 -> vector<8x128xf32>
    %127 = arith.mulf %125, %126 : vector<8x128xf32>
    %128 = arith.addf %123, %127 : vector<8x128xf32>
    %c1_71 = arith.constant 1 : index
    %c1_72 = arith.constant 1 : index
    %c0_73 = arith.constant 0 : index
    %c0_74 = arith.constant 0 : index
    %129 = vector.load %arg6[%c1_71, %c1_72, %c0_73, %c0_74] : memref<2x9x8x128xf32, #tpu.memory_space<vmem>>, vector<1x1x8x128xf32>
    %130 = vector.shape_cast %129 : vector<1x1x8x128xf32> to vector<8x128xf32>
    %c8_i32_75 = arith.constant 8 : i32
    %131 = tpu.dynamic_rotate %120 by %c8_i32_75 dim 1 : vector<8x128xf32>, i32 -> vector<8x128xf32>
    %132 = arith.mulf %130, %131 : vector<8x128xf32>
    %133 = arith.addf %128, %132 : vector<8x128xf32>
    %c1_76 = arith.constant 1 : index
    %c2_77 = arith.constant 2 : index
    %c0_78 = arith.constant 0 : index
    %c0_79 = arith.constant 0 : index
    %134 = vector.load %arg6[%c1_76, %c2_77, %c0_78, %c0_79] : memref<2x9x8x128xf32, #tpu.memory_space<vmem>>, vector<1x1x8x128xf32>
    %135 = vector.shape_cast %134 : vector<1x1x8x128xf32> to vector<8x128xf32>
    %c7_i32_80 = arith.constant 7 : i32
    %136 = tpu.dynamic_rotate %120 by %c7_i32_80 dim 1 : vector<8x128xf32>, i32 -> vector<8x128xf32>
    %137 = arith.mulf %135, %136 : vector<8x128xf32>
    %138 = arith.addf %133, %137 : vector<8x128xf32>
    %c1_81 = arith.constant 1 : index
    %c3_82 = arith.constant 3 : index
    %c0_83 = arith.constant 0 : index
    %c0_84 = arith.constant 0 : index
    %139 = vector.load %arg6[%c1_81, %c3_82, %c0_83, %c0_84] : memref<2x9x8x128xf32, #tpu.memory_space<vmem>>, vector<1x1x8x128xf32>
    %140 = vector.shape_cast %139 : vector<1x1x8x128xf32> to vector<8x128xf32>
    %c1_i32_85 = arith.constant 1 : i32
    %141 = tpu.dynamic_rotate %120 by %c1_i32_85 dim 1 : vector<8x128xf32>, i32 -> vector<8x128xf32>
    %142 = arith.mulf %140, %141 : vector<8x128xf32>
    %143 = arith.addf %138, %142 : vector<8x128xf32>
    %c1_86 = arith.constant 1 : index
    %c5_87 = arith.constant 5 : index
    %c0_88 = arith.constant 0 : index
    %c0_89 = arith.constant 0 : index
    %144 = vector.load %arg6[%c1_86, %c5_87, %c0_88, %c0_89] : memref<2x9x8x128xf32, #tpu.memory_space<vmem>>, vector<1x1x8x128xf32>
    %145 = vector.shape_cast %144 : vector<1x1x8x128xf32> to vector<8x128xf32>
    %c127_i32_90 = arith.constant 127 : i32
    %146 = tpu.dynamic_rotate %120 by %c127_i32_90 dim 1 : vector<8x128xf32>, i32 -> vector<8x128xf32>
    %147 = arith.mulf %145, %146 : vector<8x128xf32>
    %148 = arith.addf %143, %147 : vector<8x128xf32>
    %c1_91 = arith.constant 1 : index
    %c6_92 = arith.constant 6 : index
    %c0_93 = arith.constant 0 : index
    %c0_94 = arith.constant 0 : index
    %149 = vector.load %arg6[%c1_91, %c6_92, %c0_93, %c0_94] : memref<2x9x8x128xf32, #tpu.memory_space<vmem>>, vector<1x1x8x128xf32>
    %150 = vector.shape_cast %149 : vector<1x1x8x128xf32> to vector<8x128xf32>
    %c121_i32_95 = arith.constant 121 : i32
    %151 = tpu.dynamic_rotate %120 by %c121_i32_95 dim 1 : vector<8x128xf32>, i32 -> vector<8x128xf32>
    %152 = arith.mulf %150, %151 : vector<8x128xf32>
    %153 = arith.addf %148, %152 : vector<8x128xf32>
    %c1_96 = arith.constant 1 : index
    %c7_97 = arith.constant 7 : index
    %c0_98 = arith.constant 0 : index
    %c0_99 = arith.constant 0 : index
    %154 = vector.load %arg6[%c1_96, %c7_97, %c0_98, %c0_99] : memref<2x9x8x128xf32, #tpu.memory_space<vmem>>, vector<1x1x8x128xf32>
    %155 = vector.shape_cast %154 : vector<1x1x8x128xf32> to vector<8x128xf32>
    %c120_i32_100 = arith.constant 120 : i32
    %156 = tpu.dynamic_rotate %120 by %c120_i32_100 dim 1 : vector<8x128xf32>, i32 -> vector<8x128xf32>
    %157 = arith.mulf %155, %156 : vector<8x128xf32>
    %158 = arith.addf %153, %157 : vector<8x128xf32>
    %c1_101 = arith.constant 1 : index
    %c8_102 = arith.constant 8 : index
    %c0_103 = arith.constant 0 : index
    %c0_104 = arith.constant 0 : index
    %159 = vector.load %arg6[%c1_101, %c8_102, %c0_103, %c0_104] : memref<2x9x8x128xf32, #tpu.memory_space<vmem>>, vector<1x1x8x128xf32>
    %160 = vector.shape_cast %159 : vector<1x1x8x128xf32> to vector<8x128xf32>
    %c119_i32_105 = arith.constant 119 : i32
    %161 = tpu.dynamic_rotate %120 by %c119_i32_105 dim 1 : vector<8x128xf32>, i32 -> vector<8x128xf32>
    %162 = arith.mulf %160, %161 : vector<8x128xf32>
    %163 = arith.addf %158, %162 : vector<8x128xf32>
    %c1_106 = arith.constant 1 : index
    %c0_107 = arith.constant 0 : index
    %c0_108 = arith.constant 0 : index
    %164 = vector.load %arg7[%c1_106, %c0_107, %c0_108] : memref<2x8x8xbf16, #tpu.memory_space<vmem>>, vector<1x8x8xbf16>
    %165 = vector.shape_cast %164 : vector<1x8x8xbf16> to vector<8x8xbf16>
    %166 = arith.truncf %163 : vector<8x128xf32> to vector<8x128xbf16>
    %cst_109 = arith.constant dense<0.000000e+00> : vector<8x128xf32>
    %167 = tpu.matmul %165, %166, %cst_109 {dimension_numbers = #tpu.dot_dimension_numbers<[1], [0], [0], [1], [0, 0, 1, 1], [], []>} : vector<8x8xbf16>, vector<8x128xbf16>, vector<8x128xf32> -> vector<8x128xf32>
    %cst_110 = arith.constant dense<0.000000e+00> : vector<8xf32>
    %168 = vector.multi_reduction <add>, %167, %cst_110 [1] : vector<8x128xf32> to vector<8xf32>
    %169 = vector.shape_cast %168 : vector<8xf32> to vector<8x1xf32>
    %cst_111 = arith.constant 1.280000e+02 : f32
    %170 = vector.broadcast %cst_111 : f32 to vector<8x1xf32>
    %171 = arith.divf %169, %170 : vector<8x1xf32>
    %172 = arith.mulf %167, %167 : vector<8x128xf32>
    %cst_112 = arith.constant dense<0.000000e+00> : vector<8xf32>
    %173 = vector.multi_reduction <add>, %172, %cst_112 [1] : vector<8x128xf32> to vector<8xf32>
    %174 = vector.shape_cast %173 : vector<8xf32> to vector<8x1xf32>
    %cst_113 = arith.constant 1.280000e+02 : f32
    %175 = vector.broadcast %cst_113 : f32 to vector<8x1xf32>
    %176 = arith.divf %174, %175 : vector<8x1xf32>
    %177 = arith.mulf %171, %171 : vector<8x1xf32>
    %178 = arith.subf %176, %177 : vector<8x1xf32>
    %179 = vector.broadcast %171 : vector<8x1xf32> to vector<8x128xf32>
    %180 = arith.subf %167, %179 : vector<8x128xf32>
    %cst_114 = arith.constant 9.99999974E-6 : f32
    %181 = vector.broadcast %cst_114 : f32 to vector<8x1xf32>
    %182 = arith.addf %178, %181 : vector<8x1xf32>
    %183 = math.rsqrt %182 : vector<8x1xf32>
    %184 = vector.broadcast %183 : vector<8x1xf32> to vector<8x128xf32>
    %185 = arith.mulf %180, %184 : vector<8x128xf32>
    %c0_115 = arith.constant 0 : index
    %186 = memref.load %arg1[%c0_115] : memref<5xf32, #tpu.memory_space<smem>>
    %c0_116 = arith.constant 0 : index
    %c1_117 = arith.constant 1 : index
    %187 = memref.load %arg0[%c0_116, %c1_117] : memref<5x4xf32, #tpu.memory_space<smem>>
    %188 = arith.mulf %186, %187 : f32
    %c0_118 = arith.constant 0 : index
    %c2_119 = arith.constant 2 : index
    %189 = memref.load %arg0[%c0_118, %c2_119] : memref<5x4xf32, #tpu.memory_space<smem>>
    %190 = arith.mulf %186, %189 : f32
    %c0_120 = arith.constant 0 : index
    %c3_121 = arith.constant 3 : index
    %191 = memref.load %arg0[%c0_120, %c3_121] : memref<5x4xf32, #tpu.memory_space<smem>>
    %192 = arith.mulf %186, %191 : f32
    %193 = vector.extract_strided_slice %33 {offsets = [0, 0], sizes = [4, 128], strides = [1, 1]} : vector<8x128xf32> to vector<4x128xf32>
    %194 = vector.broadcast %188 : f32 to vector<4x128xf32>
    %195 = arith.mulf %194, %193 : vector<4x128xf32>
    %196 = vector.extract_strided_slice %51 {offsets = [0, 0], sizes = [4, 128], strides = [1, 1]} : vector<8x128xf32> to vector<4x128xf32>
    %197 = vector.broadcast %190 : f32 to vector<4x128xf32>
    %198 = arith.mulf %197, %196 : vector<4x128xf32>
    %199 = arith.addf %195, %198 : vector<4x128xf32>
    %200 = vector.extract_strided_slice %185 {offsets = [0, 0], sizes = [4, 128], strides = [1, 1]} : vector<8x128xf32> to vector<4x128xf32>
    %201 = vector.broadcast %192 : f32 to vector<4x128xf32>
    %202 = arith.mulf %201, %200 : vector<4x128xf32>
    %203 = arith.addf %199, %202 : vector<4x128xf32>
    %204 = vector.extract_strided_slice %29 {offsets = [4, 0], sizes = [12, 128], strides = [1, 1]} : vector<16x128xf32> to vector<12x128xf32>
    %205 = vector.broadcast %186 : f32 to vector<12x128xf32>
    %206 = arith.mulf %205, %204 : vector<12x128xf32>
    %c1_122 = arith.constant 1 : index
    %207 = memref.load %arg1[%c1_122] : memref<5xf32, #tpu.memory_space<smem>>
    %c1_123 = arith.constant 1 : index
    %c1_124 = arith.constant 1 : index
    %208 = memref.load %arg0[%c1_123, %c1_124] : memref<5x4xf32, #tpu.memory_space<smem>>
    %209 = arith.mulf %207, %208 : f32
    %c1_125 = arith.constant 1 : index
    %c2_126 = arith.constant 2 : index
    %210 = memref.load %arg0[%c1_125, %c2_126] : memref<5x4xf32, #tpu.memory_space<smem>>
    %211 = arith.mulf %207, %210 : f32
    %c1_127 = arith.constant 1 : index
    %c3_128 = arith.constant 3 : index
    %212 = memref.load %arg0[%c1_127, %c3_128] : memref<5x4xf32, #tpu.memory_space<smem>>
    %213 = arith.mulf %207, %212 : f32
    %214 = vector.extract_strided_slice %33 {offsets = [4, 0], sizes = [4, 128], strides = [1, 1]} : vector<8x128xf32> to vector<4x128xf32>
    %215 = vector.broadcast %209 : f32 to vector<4x128xf32>
    %216 = arith.mulf %215, %214 : vector<4x128xf32>
    %217 = vector.extract_strided_slice %51 {offsets = [4, 0], sizes = [4, 128], strides = [1, 1]} : vector<8x128xf32> to vector<4x128xf32>
    %218 = vector.broadcast %211 : f32 to vector<4x128xf32>
    %219 = arith.mulf %218, %217 : vector<4x128xf32>
    %220 = arith.addf %216, %219 : vector<4x128xf32>
    %221 = vector.extract_strided_slice %185 {offsets = [4, 0], sizes = [4, 128], strides = [1, 1]} : vector<8x128xf32> to vector<4x128xf32>
    %222 = vector.broadcast %213 : f32 to vector<4x128xf32>
    %223 = arith.mulf %222, %221 : vector<4x128xf32>
    %224 = arith.addf %220, %223 : vector<4x128xf32>
    %225 = vector.extract_strided_slice %30 {offsets = [4, 0], sizes = [12, 128], strides = [1, 1]} : vector<16x128xf32> to vector<12x128xf32>
    %226 = vector.broadcast %207 : f32 to vector<12x128xf32>
    %227 = arith.mulf %226, %225 : vector<12x128xf32>
    %228 = arith.addf %203, %224 : vector<4x128xf32>
    %229 = arith.addf %206, %227 : vector<12x128xf32>
    %230 = tpu.concatenate %228, %229 in 0 : vector<4x128xf32>, vector<12x128xf32> -> vector<16x128xf32>
    %c0_129 = arith.constant 0 : index
    %c0_130 = arith.constant 0 : index
    %231 = vector.load %arg5[%c0_129, %c0_130] : memref<16x16xf32, #tpu.memory_space<vmem>>, vector<16x16xf32>
    %cst_131 = arith.constant dense<0.000000e+00> : vector<16x128xf32>
    %232 = tpu.matmul %231, %230, %cst_131 {dimension_numbers = #tpu.dot_dimension_numbers<[1], [0], [0], [1], [0, 0, 1, 1], [], []>} : vector<16x16xf32>, vector<16x128xf32>, vector<16x128xf32> -> vector<16x128xf32>
    %233 = vector.extract_strided_slice %29 {offsets = [0, 0], sizes = [4, 128], strides = [1, 1]} : vector<16x128xf32> to vector<4x128xf32>
    %234 = vector.extract_strided_slice %30 {offsets = [0, 0], sizes = [4, 128], strides = [1, 1]} : vector<16x128xf32> to vector<4x128xf32>
    %235 = vector.extract_strided_slice %232 {offsets = [0, 0], sizes = [4, 128], strides = [1, 1]} : vector<16x128xf32> to vector<4x128xf32>
    %236 = tpu.concatenate %233, %234, %235 in 0 : vector<4x128xf32>, vector<4x128xf32>, vector<4x128xf32> -> vector<12x128xf32>
    %c1_i32_132 = arith.constant 1 : i32
    %237 = tpu.dynamic_rotate %236 by %c1_i32_132 dim 1 : vector<12x128xf32>, i32 -> vector<12x128xf32>
    %238 = vector.broadcast %0 : vector<1x128xf32> to vector<12x128xf32>
    %239 = arith.mulf %237, %238 : vector<12x128xf32>
    %240 = arith.addf %236, %239 : vector<12x128xf32>
    %c127_i32_133 = arith.constant 127 : i32
    %241 = tpu.dynamic_rotate %236 by %c127_i32_133 dim 1 : vector<12x128xf32>, i32 -> vector<12x128xf32>
    %242 = vector.broadcast %1 : vector<1x128xf32> to vector<12x128xf32>
    %243 = arith.mulf %241, %242 : vector<12x128xf32>
    %244 = arith.addf %240, %243 : vector<12x128xf32>
    %c8_i32_134 = arith.constant 8 : i32
    %245 = tpu.dynamic_rotate %244 by %c8_i32_134 dim 1 : vector<12x128xf32>, i32 -> vector<12x128xf32>
    %246 = vector.broadcast %2 : vector<1x128xf32> to vector<12x128xf32>
    %247 = arith.mulf %245, %246 : vector<12x128xf32>
    %248 = arith.addf %244, %247 : vector<12x128xf32>
    %c120_i32_135 = arith.constant 120 : i32
    %249 = tpu.dynamic_rotate %244 by %c120_i32_135 dim 1 : vector<12x128xf32>, i32 -> vector<12x128xf32>
    %250 = vector.broadcast %3 : vector<1x128xf32> to vector<12x128xf32>
    %251 = arith.mulf %249, %250 : vector<12x128xf32>
    %252 = arith.addf %248, %251 : vector<12x128xf32>
    %253 = vector.broadcast %4 : vector<1x128xf32> to vector<12x128xf32>
    %254 = arith.mulf %252, %253 : vector<12x128xf32>
    %cst_136 = arith.constant 0.000000e+00 : f32
    %255 = vector.broadcast %cst_136 : f32 to vector<12x128xf32>
    %256 = arith.maximumf %236, %255 : vector<12x128xf32>
    %c0_137 = arith.constant 0 : index
    %c4_138 = arith.constant 4 : index
    %c0_139 = arith.constant 0 : index
    %c0_140 = arith.constant 0 : index
    %257 = vector.load %arg8[%c0_137, %c4_138, %c0_139, %c0_140] : memref<2x9x12x128xf32, #tpu.memory_space<vmem>>, vector<1x1x12x128xf32>
    %258 = vector.shape_cast %257 : vector<1x1x12x128xf32> to vector<12x128xf32>
    %259 = arith.mulf %258, %256 : vector<12x128xf32>
    %c0_141 = arith.constant 0 : index
    %c0_142 = arith.constant 0 : index
    %c0_143 = arith.constant 0 : index
    %c0_144 = arith.constant 0 : index
    %260 = vector.load %arg8[%c0_141, %c0_142, %c0_143, %c0_144] : memref<2x9x12x128xf32, #tpu.memory_space<vmem>>, vector<1x1x12x128xf32>
    %261 = vector.shape_cast %260 : vector<1x1x12x128xf32> to vector<12x128xf32>
    %c9_i32_145 = arith.constant 9 : i32
    %262 = tpu.dynamic_rotate %256 by %c9_i32_145 dim 1 : vector<12x128xf32>, i32 -> vector<12x128xf32>
    %263 = arith.mulf %261, %262 : vector<12x128xf32>
    %264 = arith.addf %259, %263 : vector<12x128xf32>
    %c0_146 = arith.constant 0 : index
    %c1_147 = arith.constant 1 : index
    %c0_148 = arith.constant 0 : index
    %c0_149 = arith.constant 0 : index
    %265 = vector.load %arg8[%c0_146, %c1_147, %c0_148, %c0_149] : memref<2x9x12x128xf32, #tpu.memory_space<vmem>>, vector<1x1x12x128xf32>
    %266 = vector.shape_cast %265 : vector<1x1x12x128xf32> to vector<12x128xf32>
    %c8_i32_150 = arith.constant 8 : i32
    %267 = tpu.dynamic_rotate %256 by %c8_i32_150 dim 1 : vector<12x128xf32>, i32 -> vector<12x128xf32>
    %268 = arith.mulf %266, %267 : vector<12x128xf32>
    %269 = arith.addf %264, %268 : vector<12x128xf32>
    %c0_151 = arith.constant 0 : index
    %c2_152 = arith.constant 2 : index
    %c0_153 = arith.constant 0 : index
    %c0_154 = arith.constant 0 : index
    %270 = vector.load %arg8[%c0_151, %c2_152, %c0_153, %c0_154] : memref<2x9x12x128xf32, #tpu.memory_space<vmem>>, vector<1x1x12x128xf32>
    %271 = vector.shape_cast %270 : vector<1x1x12x128xf32> to vector<12x128xf32>
    %c7_i32_155 = arith.constant 7 : i32
    %272 = tpu.dynamic_rotate %256 by %c7_i32_155 dim 1 : vector<12x128xf32>, i32 -> vector<12x128xf32>
    %273 = arith.mulf %271, %272 : vector<12x128xf32>
    %274 = arith.addf %269, %273 : vector<12x128xf32>
    %c0_156 = arith.constant 0 : index
    %c3_157 = arith.constant 3 : index
    %c0_158 = arith.constant 0 : index
    %c0_159 = arith.constant 0 : index
    %275 = vector.load %arg8[%c0_156, %c3_157, %c0_158, %c0_159] : memref<2x9x12x128xf32, #tpu.memory_space<vmem>>, vector<1x1x12x128xf32>
    %276 = vector.shape_cast %275 : vector<1x1x12x128xf32> to vector<12x128xf32>
    %c1_i32_160 = arith.constant 1 : i32
    %277 = tpu.dynamic_rotate %256 by %c1_i32_160 dim 1 : vector<12x128xf32>, i32 -> vector<12x128xf32>
    %278 = arith.mulf %276, %277 : vector<12x128xf32>
    %279 = arith.addf %274, %278 : vector<12x128xf32>
    %c0_161 = arith.constant 0 : index
    %c5_162 = arith.constant 5 : index
    %c0_163 = arith.constant 0 : index
    %c0_164 = arith.constant 0 : index
    %280 = vector.load %arg8[%c0_161, %c5_162, %c0_163, %c0_164] : memref<2x9x12x128xf32, #tpu.memory_space<vmem>>, vector<1x1x12x128xf32>
    %281 = vector.shape_cast %280 : vector<1x1x12x128xf32> to vector<12x128xf32>
    %c127_i32_165 = arith.constant 127 : i32
    %282 = tpu.dynamic_rotate %256 by %c127_i32_165 dim 1 : vector<12x128xf32>, i32 -> vector<12x128xf32>
    %283 = arith.mulf %281, %282 : vector<12x128xf32>
    %284 = arith.addf %279, %283 : vector<12x128xf32>
    %c0_166 = arith.constant 0 : index
    %c6_167 = arith.constant 6 : index
    %c0_168 = arith.constant 0 : index
    %c0_169 = arith.constant 0 : index
    %285 = vector.load %arg8[%c0_166, %c6_167, %c0_168, %c0_169] : memref<2x9x12x128xf32, #tpu.memory_space<vmem>>, vector<1x1x12x128xf32>
    %286 = vector.shape_cast %285 : vector<1x1x12x128xf32> to vector<12x128xf32>
    %c121_i32_170 = arith.constant 121 : i32
    %287 = tpu.dynamic_rotate %256 by %c121_i32_170 dim 1 : vector<12x128xf32>, i32 -> vector<12x128xf32>
    %288 = arith.mulf %286, %287 : vector<12x128xf32>
    %289 = arith.addf %284, %288 : vector<12x128xf32>
    %c0_171 = arith.constant 0 : index
    %c7_172 = arith.constant 7 : index
    %c0_173 = arith.constant 0 : index
    %c0_174 = arith.constant 0 : index
    %290 = vector.load %arg8[%c0_171, %c7_172, %c0_173, %c0_174] : memref<2x9x12x128xf32, #tpu.memory_space<vmem>>, vector<1x1x12x128xf32>
    %291 = vector.shape_cast %290 : vector<1x1x12x128xf32> to vector<12x128xf32>
    %c120_i32_175 = arith.constant 120 : i32
    %292 = tpu.dynamic_rotate %256 by %c120_i32_175 dim 1 : vector<12x128xf32>, i32 -> vector<12x128xf32>
    %293 = arith.mulf %291, %292 : vector<12x128xf32>
    %294 = arith.addf %289, %293 : vector<12x128xf32>
    %c0_176 = arith.constant 0 : index
    %c8_177 = arith.constant 8 : index
    %c0_178 = arith.constant 0 : index
    %c0_179 = arith.constant 0 : index
    %295 = vector.load %arg8[%c0_176, %c8_177, %c0_178, %c0_179] : memref<2x9x12x128xf32, #tpu.memory_space<vmem>>, vector<1x1x12x128xf32>
    %296 = vector.shape_cast %295 : vector<1x1x12x128xf32> to vector<12x128xf32>
    %c119_i32_180 = arith.constant 119 : i32
    %297 = tpu.dynamic_rotate %256 by %c119_i32_180 dim 1 : vector<12x128xf32>, i32 -> vector<12x128xf32>
    %298 = arith.mulf %296, %297 : vector<12x128xf32>
    %299 = arith.addf %294, %298 : vector<12x128xf32>
    %c0_181 = arith.constant 0 : index
    %c0_182 = arith.constant 0 : index
    %c0_183 = arith.constant 0 : index
    %300 = vector.load %arg9[%c0_181, %c0_182, %c0_183] : memref<2x12x12xbf16, #tpu.memory_space<vmem>>, vector<1x12x12xbf16>
    %301 = vector.shape_cast %300 : vector<1x12x12xbf16> to vector<12x12xbf16>
    %302 = arith.truncf %299 : vector<12x128xf32> to vector<12x128xbf16>
    %cst_184 = arith.constant dense<0.000000e+00> : vector<12x128xf32>
    %303 = tpu.matmul %301, %302, %cst_184 {dimension_numbers = #tpu.dot_dimension_numbers<[1], [0], [0], [1], [0, 0, 1, 1], [], []>} : vector<12x12xbf16>, vector<12x128xbf16>, vector<12x128xf32> -> vector<12x128xf32>
    %cst_185 = arith.constant dense<0.000000e+00> : vector<12xf32>
    %304 = vector.multi_reduction <add>, %303, %cst_185 [1] : vector<12x128xf32> to vector<12xf32>
    %305 = vector.shape_cast %304 : vector<12xf32> to vector<12x1xf32>
    %cst_186 = arith.constant 1.280000e+02 : f32
    %306 = vector.broadcast %cst_186 : f32 to vector<12x1xf32>
    %307 = arith.divf %305, %306 : vector<12x1xf32>
    %308 = arith.mulf %303, %303 : vector<12x128xf32>
    %cst_187 = arith.constant dense<0.000000e+00> : vector<12xf32>
    %309 = vector.multi_reduction <add>, %308, %cst_187 [1] : vector<12x128xf32> to vector<12xf32>
    %310 = vector.shape_cast %309 : vector<12xf32> to vector<12x1xf32>
    %cst_188 = arith.constant 1.280000e+02 : f32
    %311 = vector.broadcast %cst_188 : f32 to vector<12x1xf32>
    %312 = arith.divf %310, %311 : vector<12x1xf32>
    %313 = arith.mulf %307, %307 : vector<12x1xf32>
    %314 = arith.subf %312, %313 : vector<12x1xf32>
    %315 = vector.broadcast %307 : vector<12x1xf32> to vector<12x128xf32>
    %316 = arith.subf %303, %315 : vector<12x128xf32>
    %cst_189 = arith.constant 9.99999974E-6 : f32
    %317 = vector.broadcast %cst_189 : f32 to vector<12x1xf32>
    %318 = arith.addf %314, %317 : vector<12x1xf32>
    %319 = math.rsqrt %318 : vector<12x1xf32>
    %320 = vector.broadcast %319 : vector<12x1xf32> to vector<12x128xf32>
    %321 = arith.mulf %316, %320 : vector<12x128xf32>
    %cst_190 = arith.constant 0.000000e+00 : f32
    %322 = vector.broadcast %cst_190 : f32 to vector<12x128xf32>
    %323 = arith.maximumf %321, %322 : vector<12x128xf32>
    %c1_191 = arith.constant 1 : index
    %c4_192 = arith.constant 4 : index
    %c0_193 = arith.constant 0 : index
    %c0_194 = arith.constant 0 : index
    %324 = vector.load %arg8[%c1_191, %c4_192, %c0_193, %c0_194] : memref<2x9x12x128xf32, #tpu.memory_space<vmem>>, vector<1x1x12x128xf32>
    %325 = vector.shape_cast %324 : vector<1x1x12x128xf32> to vector<12x128xf32>
    %326 = arith.mulf %325, %323 : vector<12x128xf32>
    %c1_195 = arith.constant 1 : index
    %c0_196 = arith.constant 0 : index
    %c0_197 = arith.constant 0 : index
    %c0_198 = arith.constant 0 : index
    %327 = vector.load %arg8[%c1_195, %c0_196, %c0_197, %c0_198] : memref<2x9x12x128xf32, #tpu.memory_space<vmem>>, vector<1x1x12x128xf32>
    %328 = vector.shape_cast %327 : vector<1x1x12x128xf32> to vector<12x128xf32>
    %c9_i32_199 = arith.constant 9 : i32
    %329 = tpu.dynamic_rotate %323 by %c9_i32_199 dim 1 : vector<12x128xf32>, i32 -> vector<12x128xf32>
    %330 = arith.mulf %328, %329 : vector<12x128xf32>
    %331 = arith.addf %326, %330 : vector<12x128xf32>
    %c1_200 = arith.constant 1 : index
    %c1_201 = arith.constant 1 : index
    %c0_202 = arith.constant 0 : index
    %c0_203 = arith.constant 0 : index
    %332 = vector.load %arg8[%c1_200, %c1_201, %c0_202, %c0_203] : memref<2x9x12x128xf32, #tpu.memory_space<vmem>>, vector<1x1x12x128xf32>
    %333 = vector.shape_cast %332 : vector<1x1x12x128xf32> to vector<12x128xf32>
    %c8_i32_204 = arith.constant 8 : i32
    %334 = tpu.dynamic_rotate %323 by %c8_i32_204 dim 1 : vector<12x128xf32>, i32 -> vector<12x128xf32>
    %335 = arith.mulf %333, %334 : vector<12x128xf32>
    %336 = arith.addf %331, %335 : vector<12x128xf32>
    %c1_205 = arith.constant 1 : index
    %c2_206 = arith.constant 2 : index
    %c0_207 = arith.constant 0 : index
    %c0_208 = arith.constant 0 : index
    %337 = vector.load %arg8[%c1_205, %c2_206, %c0_207, %c0_208] : memref<2x9x12x128xf32, #tpu.memory_space<vmem>>, vector<1x1x12x128xf32>
    %338 = vector.shape_cast %337 : vector<1x1x12x128xf32> to vector<12x128xf32>
    %c7_i32_209 = arith.constant 7 : i32
    %339 = tpu.dynamic_rotate %323 by %c7_i32_209 dim 1 : vector<12x128xf32>, i32 -> vector<12x128xf32>
    %340 = arith.mulf %338, %339 : vector<12x128xf32>
    %341 = arith.addf %336, %340 : vector<12x128xf32>
    %c1_210 = arith.constant 1 : index
    %c3_211 = arith.constant 3 : index
    %c0_212 = arith.constant 0 : index
    %c0_213 = arith.constant 0 : index
    %342 = vector.load %arg8[%c1_210, %c3_211, %c0_212, %c0_213] : memref<2x9x12x128xf32, #tpu.memory_space<vmem>>, vector<1x1x12x128xf32>
    %343 = vector.shape_cast %342 : vector<1x1x12x128xf32> to vector<12x128xf32>
    %c1_i32_214 = arith.constant 1 : i32
    %344 = tpu.dynamic_rotate %323 by %c1_i32_214 dim 1 : vector<12x128xf32>, i32 -> vector<12x128xf32>
    %345 = arith.mulf %343, %344 : vector<12x128xf32>
    %346 = arith.addf %341, %345 : vector<12x128xf32>
    %c1_215 = arith.constant 1 : index
    %c5_216 = arith.constant 5 : index
    %c0_217 = arith.constant 0 : index
    %c0_218 = arith.constant 0 : index
    %347 = vector.load %arg8[%c1_215, %c5_216, %c0_217, %c0_218] : memref<2x9x12x128xf32, #tpu.memory_space<vmem>>, vector<1x1x12x128xf32>
    %348 = vector.shape_cast %347 : vector<1x1x12x128xf32> to vector<12x128xf32>
    %c127_i32_219 = arith.constant 127 : i32
    %349 = tpu.dynamic_rotate %323 by %c127_i32_219 dim 1 : vector<12x128xf32>, i32 -> vector<12x128xf32>
    %350 = arith.mulf %348, %349 : vector<12x128xf32>
    %351 = arith.addf %346, %350 : vector<12x128xf32>
    %c1_220 = arith.constant 1 : index
    %c6_221 = arith.constant 6 : index
    %c0_222 = arith.constant 0 : index
    %c0_223 = arith.constant 0 : index
    %352 = vector.load %arg8[%c1_220, %c6_221, %c0_222, %c0_223] : memref<2x9x12x128xf32, #tpu.memory_space<vmem>>, vector<1x1x12x128xf32>
    %353 = vector.shape_cast %352 : vector<1x1x12x128xf32> to vector<12x128xf32>
    %c121_i32_224 = arith.constant 121 : i32
    %354 = tpu.dynamic_rotate %323 by %c121_i32_224 dim 1 : vector<12x128xf32>, i32 -> vector<12x128xf32>
    %355 = arith.mulf %353, %354 : vector<12x128xf32>
    %356 = arith.addf %351, %355 : vector<12x128xf32>
    %c1_225 = arith.constant 1 : index
    %c7_226 = arith.constant 7 : index
    %c0_227 = arith.constant 0 : index
    %c0_228 = arith.constant 0 : index
    %357 = vector.load %arg8[%c1_225, %c7_226, %c0_227, %c0_228] : memref<2x9x12x128xf32, #tpu.memory_space<vmem>>, vector<1x1x12x128xf32>
    %358 = vector.shape_cast %357 : vector<1x1x12x128xf32> to vector<12x128xf32>
    %c120_i32_229 = arith.constant 120 : i32
    %359 = tpu.dynamic_rotate %323 by %c120_i32_229 dim 1 : vector<12x128xf32>, i32 -> vector<12x128xf32>
    %360 = arith.mulf %358, %359 : vector<12x128xf32>
    %361 = arith.addf %356, %360 : vector<12x128xf32>
    %c1_230 = arith.constant 1 : index
    %c8_231 = arith.constant 8 : index
    %c0_232 = arith.constant 0 : index
    %c0_233 = arith.constant 0 : index
    %362 = vector.load %arg8[%c1_230, %c8_231, %c0_232, %c0_233] : memref<2x9x12x128xf32, #tpu.memory_space<vmem>>, vector<1x1x12x128xf32>
    %363 = vector.shape_cast %362 : vector<1x1x12x128xf32> to vector<12x128xf32>
    %c119_i32_234 = arith.constant 119 : i32
    %364 = tpu.dynamic_rotate %323 by %c119_i32_234 dim 1 : vector<12x128xf32>, i32 -> vector<12x128xf32>
    %365 = arith.mulf %363, %364 : vector<12x128xf32>
    %366 = arith.addf %361, %365 : vector<12x128xf32>
    %c1_235 = arith.constant 1 : index
    %c0_236 = arith.constant 0 : index
    %c0_237 = arith.constant 0 : index
    %367 = vector.load %arg9[%c1_235, %c0_236, %c0_237] : memref<2x12x12xbf16, #tpu.memory_space<vmem>>, vector<1x12x12xbf16>
    %368 = vector.shape_cast %367 : vector<1x12x12xbf16> to vector<12x12xbf16>
    %369 = arith.truncf %366 : vector<12x128xf32> to vector<12x128xbf16>
    %cst_238 = arith.constant dense<0.000000e+00> : vector<12x128xf32>
    %370 = tpu.matmul %368, %369, %cst_238 {dimension_numbers = #tpu.dot_dimension_numbers<[1], [0], [0], [1], [0, 0, 1, 1], [], []>} : vector<12x12xbf16>, vector<12x128xbf16>, vector<12x128xf32> -> vector<12x128xf32>
    %cst_239 = arith.constant dense<0.000000e+00> : vector<12xf32>
    %371 = vector.multi_reduction <add>, %370, %cst_239 [1] : vector<12x128xf32> to vector<12xf32>
    %372 = vector.shape_cast %371 : vector<12xf32> to vector<12x1xf32>
    %cst_240 = arith.constant 1.280000e+02 : f32
    %373 = vector.broadcast %cst_240 : f32 to vector<12x1xf32>
    %374 = arith.divf %372, %373 : vector<12x1xf32>
    %375 = arith.mulf %370, %370 : vector<12x128xf32>
    %cst_241 = arith.constant dense<0.000000e+00> : vector<12xf32>
    %376 = vector.multi_reduction <add>, %375, %cst_241 [1] : vector<12x128xf32> to vector<12xf32>
    %377 = vector.shape_cast %376 : vector<12xf32> to vector<12x1xf32>
    %cst_242 = arith.constant 1.280000e+02 : f32
    %378 = vector.broadcast %cst_242 : f32 to vector<12x1xf32>
    %379 = arith.divf %377, %378 : vector<12x1xf32>
    %380 = arith.mulf %374, %374 : vector<12x1xf32>
    %381 = arith.subf %379, %380 : vector<12x1xf32>
    %382 = vector.broadcast %374 : vector<12x1xf32> to vector<12x128xf32>
    %383 = arith.subf %370, %382 : vector<12x128xf32>
    %cst_243 = arith.constant 9.99999974E-6 : f32
    %384 = vector.broadcast %cst_243 : f32 to vector<12x1xf32>
    %385 = arith.addf %381, %384 : vector<12x1xf32>
    %386 = math.rsqrt %385 : vector<12x1xf32>
    %387 = vector.broadcast %386 : vector<12x1xf32> to vector<12x128xf32>
    %388 = arith.mulf %383, %387 : vector<12x128xf32>
    %c2_244 = arith.constant 2 : index
    %389 = memref.load %arg1[%c2_244] : memref<5xf32, #tpu.memory_space<smem>>
    %c2_245 = arith.constant 2 : index
    %c1_246 = arith.constant 1 : index
    %390 = memref.load %arg0[%c2_245, %c1_246] : memref<5x4xf32, #tpu.memory_space<smem>>
    %391 = arith.mulf %389, %390 : f32
    %c2_247 = arith.constant 2 : index
    %c2_248 = arith.constant 2 : index
    %392 = memref.load %arg0[%c2_247, %c2_248] : memref<5x4xf32, #tpu.memory_space<smem>>
    %393 = arith.mulf %389, %392 : f32
    %c2_249 = arith.constant 2 : index
    %c3_250 = arith.constant 3 : index
    %394 = memref.load %arg0[%c2_249, %c3_250] : memref<5x4xf32, #tpu.memory_space<smem>>
    %395 = arith.mulf %389, %394 : f32
    %396 = vector.extract_strided_slice %236 {offsets = [0, 0], sizes = [4, 128], strides = [1, 1]} : vector<12x128xf32> to vector<4x128xf32>
    %397 = vector.broadcast %391 : f32 to vector<4x128xf32>
    %398 = arith.mulf %397, %396 : vector<4x128xf32>
    %399 = vector.extract_strided_slice %254 {offsets = [0, 0], sizes = [4, 128], strides = [1, 1]} : vector<12x128xf32> to vector<4x128xf32>
    %400 = vector.broadcast %393 : f32 to vector<4x128xf32>
    %401 = arith.mulf %400, %399 : vector<4x128xf32>
    %402 = arith.addf %398, %401 : vector<4x128xf32>
    %403 = vector.extract_strided_slice %388 {offsets = [0, 0], sizes = [4, 128], strides = [1, 1]} : vector<12x128xf32> to vector<4x128xf32>
    %404 = vector.broadcast %395 : f32 to vector<4x128xf32>
    %405 = arith.mulf %404, %403 : vector<4x128xf32>
    %406 = arith.addf %402, %405 : vector<4x128xf32>
    %407 = vector.extract_strided_slice %29 {offsets = [4, 0], sizes = [12, 128], strides = [1, 1]} : vector<16x128xf32> to vector<12x128xf32>
    %408 = vector.broadcast %389 : f32 to vector<12x128xf32>
    %409 = arith.mulf %408, %407 : vector<12x128xf32>
    %c3_251 = arith.constant 3 : index
    %410 = memref.load %arg1[%c3_251] : memref<5xf32, #tpu.memory_space<smem>>
    %c3_252 = arith.constant 3 : index
    %c1_253 = arith.constant 1 : index
    %411 = memref.load %arg0[%c3_252, %c1_253] : memref<5x4xf32, #tpu.memory_space<smem>>
    %412 = arith.mulf %410, %411 : f32
    %c3_254 = arith.constant 3 : index
    %c2_255 = arith.constant 2 : index
    %413 = memref.load %arg0[%c3_254, %c2_255] : memref<5x4xf32, #tpu.memory_space<smem>>
    %414 = arith.mulf %410, %413 : f32
    %c3_256 = arith.constant 3 : index
    %c3_257 = arith.constant 3 : index
    %415 = memref.load %arg0[%c3_256, %c3_257] : memref<5x4xf32, #tpu.memory_space<smem>>
    %416 = arith.mulf %410, %415 : f32
    %417 = vector.extract_strided_slice %236 {offsets = [4, 0], sizes = [4, 128], strides = [1, 1]} : vector<12x128xf32> to vector<4x128xf32>
    %418 = vector.broadcast %412 : f32 to vector<4x128xf32>
    %419 = arith.mulf %418, %417 : vector<4x128xf32>
    %420 = vector.extract_strided_slice %254 {offsets = [4, 0], sizes = [4, 128], strides = [1, 1]} : vector<12x128xf32> to vector<4x128xf32>
    %421 = vector.broadcast %414 : f32 to vector<4x128xf32>
    %422 = arith.mulf %421, %420 : vector<4x128xf32>
    %423 = arith.addf %419, %422 : vector<4x128xf32>
    %424 = vector.extract_strided_slice %388 {offsets = [4, 0], sizes = [4, 128], strides = [1, 1]} : vector<12x128xf32> to vector<4x128xf32>
    %425 = vector.broadcast %416 : f32 to vector<4x128xf32>
    %426 = arith.mulf %425, %424 : vector<4x128xf32>
    %427 = arith.addf %423, %426 : vector<4x128xf32>
    %428 = vector.extract_strided_slice %30 {offsets = [4, 0], sizes = [12, 128], strides = [1, 1]} : vector<16x128xf32> to vector<12x128xf32>
    %429 = vector.broadcast %410 : f32 to vector<12x128xf32>
    %430 = arith.mulf %429, %428 : vector<12x128xf32>
    %431 = arith.addf %406, %427 : vector<4x128xf32>
    %432 = arith.addf %409, %430 : vector<12x128xf32>
    %c4_258 = arith.constant 4 : index
    %433 = memref.load %arg1[%c4_258] : memref<5xf32, #tpu.memory_space<smem>>
    %c4_259 = arith.constant 4 : index
    %c1_260 = arith.constant 1 : index
    %434 = memref.load %arg0[%c4_259, %c1_260] : memref<5x4xf32, #tpu.memory_space<smem>>
    %435 = arith.mulf %433, %434 : f32
    %c4_261 = arith.constant 4 : index
    %c2_262 = arith.constant 2 : index
    %436 = memref.load %arg0[%c4_261, %c2_262] : memref<5x4xf32, #tpu.memory_space<smem>>
    %437 = arith.mulf %433, %436 : f32
    %c4_263 = arith.constant 4 : index
    %c3_264 = arith.constant 3 : index
    %438 = memref.load %arg0[%c4_263, %c3_264] : memref<5x4xf32, #tpu.memory_space<smem>>
    %439 = arith.mulf %433, %438 : f32
    %440 = vector.extract_strided_slice %236 {offsets = [8, 0], sizes = [4, 128], strides = [1, 1]} : vector<12x128xf32> to vector<4x128xf32>
    %441 = vector.broadcast %435 : f32 to vector<4x128xf32>
    %442 = arith.mulf %441, %440 : vector<4x128xf32>
    %443 = vector.extract_strided_slice %254 {offsets = [8, 0], sizes = [4, 128], strides = [1, 1]} : vector<12x128xf32> to vector<4x128xf32>
    %444 = vector.broadcast %437 : f32 to vector<4x128xf32>
    %445 = arith.mulf %444, %443 : vector<4x128xf32>
    %446 = arith.addf %442, %445 : vector<4x128xf32>
    %447 = vector.extract_strided_slice %388 {offsets = [8, 0], sizes = [4, 128], strides = [1, 1]} : vector<12x128xf32> to vector<4x128xf32>
    %448 = vector.broadcast %439 : f32 to vector<4x128xf32>
    %449 = arith.mulf %448, %447 : vector<4x128xf32>
    %450 = arith.addf %446, %449 : vector<4x128xf32>
    %451 = vector.extract_strided_slice %232 {offsets = [4, 0], sizes = [12, 128], strides = [1, 1]} : vector<16x128xf32> to vector<12x128xf32>
    %452 = vector.broadcast %433 : f32 to vector<12x128xf32>
    %453 = arith.mulf %452, %451 : vector<12x128xf32>
    %454 = arith.addf %431, %450 : vector<4x128xf32>
    %455 = arith.addf %432, %453 : vector<12x128xf32>
    %456 = tpu.concatenate %454, %455 in 0 : vector<4x128xf32>, vector<12x128xf32> -> vector<16x128xf32>
    %c0_265 = arith.constant 0 : index
    %c0_266 = arith.constant 0 : index
    %457 = vector.load %arg5[%c0_265, %c0_266] : memref<16x16xf32, #tpu.memory_space<vmem>>, vector<16x16xf32>
    %cst_267 = arith.constant dense<0.000000e+00> : vector<16x128xf32>
    %458 = tpu.matmul %457, %456, %cst_267 {dimension_numbers = #tpu.dot_dimension_numbers<[1], [0], [0], [1], [0, 0, 1, 1], [], []>} : vector<16x16xf32>, vector<16x128xf32>, vector<16x128xf32> -> vector<16x128xf32>
    %c0_268 = arith.constant 0 : index
    %c0_269 = arith.constant 0 : index
    %459 = vector.load %arg10[%c0_268, %c0_269] : memref<32x128xf32, #tpu.memory_space<vmem>>, vector<16x128xf32>
    tpu.vector_store %arg10[%c0_268, %c0_269], %232 {strides = array<i32>} : memref<32x128xf32, #tpu.memory_space<vmem>>, vector<16x128xf32>,
    %c16 = arith.constant 16 : index
    %c0_270 = arith.constant 0 : index
    %460 = vector.load %arg10[%c16, %c0_270] : memref<32x128xf32, #tpu.memory_space<vmem>>, vector<16x128xf32>
    tpu.vector_store %arg10[%c16, %c0_270], %458 {strides = array<i32>} : memref<32x128xf32, #tpu.memory_space<vmem>>, vector<16x128xf32>,
    return
  }
}

</mosaic_0001>

<bundles_post_ra>
// kernel: pc_darts_cell_forward.1
= control target key start
LH: loop header
LB: loop body
LE: loop exit
PB: predicated region body
PF: predicated region fallthrough
CT: control target
= control target key end

     0   :  { %15 = vsyncpa [#allocation3], 0  ;;  %s1867_s0 = inlined_call_operand.vmem [shape: f32[5,4], index: 0, kind: input, shape index: {}]   ;;  %s1868_s1 = inlined_call_operand.vmem [shape: f32[5], index: 1, kind: input, shape index: {}]   ;;  %s1869_s2 = inlined_call_operand.vmem [shape: f32[32,128], index: 2, kind: input, shape index: {}]   ;;  %s1870_s3 = inlined_call_operand.vmem [shape: bf16[32,32], index: 3, kind: input, shape index: {}]   ;;  %s1871_s4 = inlined_call_operand.vmem [shape: f32[5,128], index: 4, kind: input, shape index: {}]   ;;  %s1872_s5 = inlined_call_operand.vmem [shape: f32[16,16], index: 5, kind: input, shape index: {}]   ;;  %s1873_s6 = inlined_call_operand.vmem [shape: f32[2,9,8,128], index: 6, kind: input, shape index: {}]   ;;  %s1874_s7 = inlined_call_operand.vmem [shape: bf16[2,8,8], index: 7, kind: input, shape index: {}]   ;;  %s1875_s8 = inlined_call_operand.vmem [shape: f32[2,9,12,128], index: 8, kind: input, shape index: {}]   ;;  %s1876_s9 = inlined_call_operand.vmem [shape: bf16[2,12,12], index: 9, kind: input, shape index: {}]   ;;  %s1877_s10 = inlined_call_operand.vmem [shape: f32[32,128], index: 10, kind: output, shape index: {}]  }
   0x1   :  { %s23_s15 = sshll.u32 %s1867_s0, 4  ;;  %s24_s15 = int_to_ptr.vmem [resolvable:$true] %s23_s15 }
   0x2   :  { %16 = vsyncpa [#allocation5], 0  ;;  %s33_s18 = sshll.u32 %s1868_s1, 4  ;;  %s1296_s19 = scalar_lea.vmem %s24_s15, 128  ;;  %s34_s18 = int_to_ptr.vmem [resolvable:$true] %s33_s18 }
   0x3   :  { %p1297_p0 = scmp.ne.s32.totalorder %s24_s15, %s1296_s19  ;;  %p1301_p1 = scmp.lt.s32.totalorder %s24_s15, %s24_s15 }
   0x4   :  { %p1302_p2 = scmp.lt.s32.totalorder %s1296_s19, %s1296_s19 }
   0x6   :  { %p1303_p3 = por %p1302_p2, %p1301_p1 }
   0x8   :  { %p1304_p4 = pnand %p1303_p3, %p1297_p0 }
   0xa   :  { %1307 = shalt.err (!%p1304_p4)
}
   0xb   :  { %s1324_s20 = smov [#allocation2]   ;;  %s1308_s21 = scalar_lea.vmem %s34_s18, 16 }
   0xc   :  { %26 = dma.vmem_to_smem %s24_s15, 128, %s1324_s20, [#allocation3]  }
   0xd   :  { %p1309_p5 = scmp.ne.s32.totalorder %s34_s18, %s1308_s21  ;;  %p1313_p6 = scmp.lt.s32.totalorder %s34_s18, %s34_s18 }
   0xe   :  { %p1314_p7 = scmp.lt.s32.totalorder %s1308_s21, %s1308_s21 }
  0x10   :  { %p1315_p8 = por %p1314_p7, %p1313_p6 }
  0x12   :  { %p1316_p9 = pnand %p1315_p8, %p1309_p5 }
  0x14   :  { %1319 = shalt.err (!%p1316_p9)
}
  0x15   :  { %s1325_s0 = smov [#allocation4]  }
  0x16   :  { %36 = dma.vmem_to_smem %s34_s18, 16, %s1325_s0, [#allocation5]  }
  0x17   :  { %1320 = dma.done.wait [#allocation3], 128  }
  0x18   :  { %1321 = vsyncadd [#allocation3], 4294967168 }
  0x19   :  { %1322 = dma.done.wait [#allocation5], 16  }
  0x1a   :  { %1323 = vsyncadd [#allocation5], 4294967280 }
  0x1b   :  { %59 = sfence }
  0x1c   :  { %v68_v0 = vld [vmem:[%s1869_s2 + $0x10] sm:$0xff]  ;;  %v69_v1 = vld [vmem:[%s1869_s2 + $0x18] sm:$0xff]  ;;  %v66_v2 = vld [vmem:[%s1869_s2] sm:$0xff]  ;;  %vm90_vm0 = vcmask 261120   ;;  %s1419_s13 = sld [smem:[#allocation4]]  ;;  %vm202_vm1 = vcmask 1043456  }
  0x1d   :  { %v72_v3 = vmax.f32 %v68_v0, 0.0  ;;  %v73_v4 = vmax.f32 %v69_v1, 0.0  ;;  %v67_v5 = vld [vmem:[%s1869_s2 + $0x8] sm:$0xff]  ;;  %v70_v6 = vmax.f32 %v66_v2, 0.0  ;;  %v1272_v8 = vld [vmem:[%s1870_s3] sm:$0xff]   ;;  %s1415_s2 = sld [smem:[#allocation4 + $0x1]] }
  0x1e   :  { %v71_v7 = vmax.f32 %v67_v5, 0.0  ;;  %1218 = vmatprep.mubr.msk.bf16.mxu0 %vm90_vm0, %v1272_v8  ;;  %v1273_v11 = vld [vmem:[%s1870_s3 + $0x8] sm:$0xff]   ;;  %s1417_s3 = sld [smem:[#allocation4 + $0x3]]  ;;  %s1326_s15 = smov 8   ;;  %v1330_v49 = vmov 0.0   ;;  %vm1333_vm2 = vmmov 0  }
  0x1f   :  { %v75_v9 = vpack.c.bf16 %v73_v4, %v72_v3  ;;  %s1421_s14 = sld [smem:[#allocation4 + $0x2]]  ;;  %s1327_s16 = smov 9   ;;  %1222 = vmatprep.subr.bf16.mxu1 %v1330_v49  ;;  %1224 = vmatprep.mubr.msk.bf16.mxu1 %vm1333_vm2, %v1330_v49  ;;  %v1111_v50 = vld [vmem:[%s1873_s6 + $0x20] sm:$0xff]  ;;  %v1112_v54 = vld [vmem:[%s1873_s6 + $0x8] sm:$0xff]  ;;  %v1142_v55 = vld [vmem:[%s1875_s8 + $0x10] sm:$0xff]  ;;  %vm294_vm3 = vcmask 64512  }
  0x20   :  { %v74_v10 = vpack.c.bf16 %v71_v7, %v70_v6  ;;  %s1328_s17 = smov 7   ;;  %s1329_s18 = smov 127   ;;  %v245_v51 = vld [vmem:[%s1873_s6] sm:$0xff]  ;;  %v1113_v62 = vld [vmem:[%s1873_s6 + $0x10] sm:$0xff]  ;;  %vm513_vm4 = vcmask 130048   ;;  %vm701_vm5 = vcmask 1045504  }
  0x21   :  { %1214 = vmatprep.subr.bf16.mxu0 %v75_v9  ;;  %s1331_s19 = smov 1   ;;  %s1332_s20 = smov 120   ;;  %v1140_v52 = vld [vmem:[%s1875_s8 + $0x40] sm:$0xff]  ;;  %vm697_vm6 = vcmask 97280  }
  0x22   :  { %1215 = vmatpush3.bf16.msra.mxu0 %v75_v9  ;;  %v483_v36 = vstv %s1419_s13  ;;  %s1334_s21 = smov 121   ;;  %s1335_s0 = smov 119   ;;  %v618_v53 = vld [vmem:[%s1875_s8] sm:$0xff] }
  0x23   :  { %1216 = vmatprep.subr.bf16.mxu0 %v74_v10  ;;  %v501_v34 = vstv %s1415_s2  ;;  %v1144_v63 = vld [vmem:[%s1875_s8 + $0x20] sm:$0xff]  ;;  %s1131_s1 = sld [smem:[#allocation2 + $0x1]] }
  0x24   :  { %v986_v38 = vstv %s1417_s3  ;;  %s1136_s24 = sld [smem:[#allocation2 + $0x82]] }
  0x25   :  { %v968_v37 = vstv %s1421_s14  ;;  %s1135_s25 = sld [smem:[#allocation2 + $0x81]] }
  0x26   :  { %1217 = vmatpush3.bf16.msra.mxu0 %v74_v10  ;;  %v1114_v10 = vld [vmem:[%s1873_s6 + $0x18] sm:$0xff]  ;;  %s1132_s26 = sld [smem:[#allocation2 + $0x2]] }
  0x27   :  { %s1133_s27 = sld [smem:[#allocation2 + $0x3]] }
  0x28   :  { %s1137_s28 = sld [smem:[#allocation2 + $0x83]] }
  0x29   :  { %1219 = vmatmul.mubr.msk.bf16.vlgmr.msra.gmra.mxu0 %vm90_vm0, %v1273_v11  ;;  %v1146_v11 = vld [vmem:[%s1875_s8 + $0x30] sm:$0xff] }
  0x2a   :  { %s490_s30 = smul.f32 %s1136_s24, %s1415_s2 }
  0x2b   :  { %s488_s11 = smul.f32 %s1135_s25, %s1415_s2  ;;  %s1823_s25 = sld [smem:[#allocation2 + $0x101]] }
  0x2c   :  { %s472_s12 = smul.f32 %s1132_s26, %s1419_s13  ;;  %s1825_s26 = sld [smem:[#allocation2 + $0x202]] }
  0x2d   :  { %s474_s22 = smul.f32 %s1133_s27, %s1419_s13  ;;  %s1827_s27 = sld [smem:[#allocation2 + $0x103]] }
  0x2e   :  { %s492_s23 = smul.f32 %s1137_s28, %s1415_s2 }
  0xe9   :  { %v1220_v12 = vpop.f32.mrf.mxu0 }
  0xea   :  { %150 = vadd.xlane.f32.xlu0 %v1220_v12  ;;  %v161_v13 = vmul.f32 %v1220_v12, %v1220_v12 }
  0xeb   :  { %v131_v14 = vpop.f32.mrf.mxu0 }
  0xec   :  { %167 = vadd.xlane.f32.xlu1 %v161_v13  ;;  %v159_v15 = vmul.f32 %v131_v14, %v131_v14  ;;  %v1115_v13 = vld [vmem:[%s1873_s6 + $0x28] sm:$0xff] }
  0xee   :  { %146 = vadd.xlane.f32.xlu0 %v131_v14 }
  0xf0   :  { %163 = vadd.xlane.f32.xlu1 %v159_v15 }
 0x173   :  { %v151_v16 = vpop.xlane.xlu0 %150 }
 0x174   :  { %v157_v17 = vmul.f32 0.0078125, %v151_v16 }
 0x175   :  { %v168_v18 = vpop.xlane.xlu1 %167 }
 0x176   :  { %v177_v19 = vmul.f32 %v157_v17, %v157_v17  ;;  %v173_v20 = vmul.f32 0.0078125, %v168_v18  ;;  %v185_v30 = vsub.f32 %v1220_v12, %v157_v17 }
 0x177   :  { %v147_v21 = vpop.xlane.xlu0 %146 }
 0x178   :  { %v181_v22 = vsub.f32 %v173_v20, %v177_v19  ;;  %v155_v23 = vmul.f32 0.0078125, %v147_v21  ;;  %v1116_v19 = vld [vmem:[%s1873_s6 + $0x30] sm:$0xff]  ;;  %v1150_v20 = vld [vmem:[%s1875_s8 + $0x60] sm:$0xff] }
 0x179   :  { %v164_v24 = vpop.xlane.xlu1 %163 }
 0x17a   :  { %v189_v25 = vadd.f32 1e-05, %v181_v22  ;;  %v175_v26 = vmul.f32 %v155_v23, %v155_v23  ;;  %v171_v27 = vmul.f32 0.0078125, %v164_v24  ;;  %v183_v33 = vsub.f32 %v131_v14, %v155_v23  ;;  %v1148_v14 = vld [vmem:[%s1875_s8 + $0x50] sm:$0xff] }
 0x17c   :  { %1276 = vrsqrt.f32 %v189_v25  ;;  %v179_v28 = vsub.f32 %v171_v27, %v175_v26  ;;  %v1117_v25 = vld [vmem:[%s1873_s6 + $0x38] sm:$0xff] }
 0x17e   :  { %v187_v29 = vadd.f32 1e-05, %v179_v28 }
 0x180   :  { %1278 = vrsqrt.f32 %v187_v29 }
 0x189   :  { %v1277_v31 = vpop.eup %1276 }
 0x18a   :  { %v197_v32 = vmul.f32 %v1277_v31, %v185_v30 }
 0x18c   :  { %v200_v39 = vrot.slane %v197_v32, 4  ;;  %v502_v41 = vmul.f32 %v501_v34, %v197_v32  ;;  %v987_v45 = vmul.f32 %v986_v38, %v197_v32  ;;  %v1118_v32 = vld [vmem:[%s1873_s6 + $0x40] sm:$0xff] }
 0x18d   :  { %v1279_v35 = vpop.eup %1278 }
 0x18e   :  { %v195_v40 = vmul.f32 %v1279_v35, %v183_v33 }
 0x190   :  { %v1430_v42 = vsel %vm202_vm1, %v195_v40, %v200_v39  ;;  %v484_v43 = vmul.f32 %v483_v36, %v195_v40  ;;  %v969_v44 = vmul.f32 %v968_v37, %v195_v40 }
 0x191   :  { %v241_v46 = vmax.f32 %v1430_v42, 0.0 }
 0x192   :  { %v1439_v47 = vadd.f32 %v502_v41, %v484_v43  ;;  %v1441_v48 = vadd.f32 %v987_v45, %v969_v44 }
 0x193   :  { %252 = vrot.lane.b32.xlu1 %v241_v46, %s1326_s15  ;;  %246 = vrot.lane.b32.xlu0 %v241_v46, %s1327_s16  ;;  %v244_v58 = vmul.f32 %v1111_v50, %v241_v46  ;;  %v616_v60 = vmul.f32 %v1140_v52, %v241_v46  ;;  %v292_v50 = vld [vmem:[%s1874_s7] sm:$0xf] }
 0x197   :  { %258 = vrot.lane.b32.xlu1 %v241_v46, %s1328_s17  ;;  %270 = vrot.lane.b32.xlu0 %v241_v46, %s1329_s18 }
 0x19b   :  { %264 = vrot.lane.b32.xlu1 %v241_v46, %s1331_s19  ;;  %282 = vrot.lane.b32.xlu0 %v241_v46, %s1332_s20 }
 0x19f   :  { %276 = vrot.lane.b32.xlu1 %v241_v46, %s1334_s21 }
 0x1a3   :  { %288 = vrot.lane.b32.xlu1 %v241_v46, %s1335_s0 }
 0x205   :  { %v253_v56 = vpop.permute.xlu1 %252  ;;  %v247_v57 = vpop.permute.xlu0 %246 }
 0x206   :  { %v248_v59 = vmul.f32 %v247_v57, %v245_v51  ;;  %v622_v61 = vmul.f32 %v618_v53, %v247_v57  ;;  %v254_v0 = vmul.f32 %v1112_v54, %v253_v56  ;;  %v631_v1 = vmul.f32 %v1142_v55, %v253_v56 }
 0x208   :  { %v249_v2 = vadd.f32 %v248_v59, %v244_v58  ;;  %v624_v3 = vadd.f32 %v622_v61, %v616_v60 }
 0x209   :  { %v259_v4 = vpop.permute.xlu1 %258  ;;  %v271_v9 = vpop.permute.xlu0 %270 }
 0x20a   :  { %v255_v5 = vadd.f32 %v254_v0, %v249_v2  ;;  %v260_v6 = vmul.f32 %v1113_v62, %v259_v4  ;;  %v633_v7 = vadd.f32 %v631_v1, %v624_v3  ;;  %v640_v8 = vmul.f32 %v1144_v63, %v259_v4  ;;  %v1530_v3 = vpop.f32.mrf.mxu0 }
 0x20b   :  { %v272_v21 = vmul.f32 %v1115_v13, %v271_v9  ;;  %v658_v22 = vmul.f32 %v1148_v14, %v271_v9  ;;  %v1122_v9 = vld [vmem:[%s1873_s6 + $0x50] sm:$0xff]  ;;  %v1123_v14 = vld [vmem:[%s1873_s6 + $0x58] sm:$0xff] }
 0x20c   :  { %v642_v12 = vadd.f32 %v640_v8, %v633_v7  ;;  %v261_v16 = vadd.f32 %v260_v6, %v255_v5  ;;  %v1532_v4 = vpop.f32.mrf.mxu0  ;;  %v162_v5 = vmul.f32 %v1530_v3, %v1530_v3  ;;  %v1120_v7 = vld [vmem:[%s1873_s6 + $0x68] sm:$0xff] }
 0x20d   :  { %v265_v15 = vpop.permute.xlu1 %264  ;;  %v1499_v26 = vpop.permute.xlu0 %282  ;;  %v160_v6 = vmul.f32 %v1532_v4, %v1532_v4  ;;  %v1121_v8 = vld [vmem:[%s1873_s6 + $0x48] sm:$0xff] }
 0x20e   :  { %v266_v17 = vmul.f32 %v1114_v10, %v265_v15  ;;  %v649_v18 = vmul.f32 %v1146_v11, %v265_v15  ;;  %v284_v33 = vmul.f32 %v1117_v25, %v1499_v26  ;;  %v1126_v25 = vld [vmem:[%s1873_s6 + $0x78] sm:$0xff] }
 0x210   :  { %v267_v23 = vadd.f32 %v266_v17, %v261_v16  ;;  %v651_v24 = vadd.f32 %v649_v18, %v642_v12  ;;  %v1124_v17 = vld [vmem:[%s1873_s6 + $0x60] sm:$0xff] }
 0x211   :  { %v277_v27 = vpop.permute.xlu1 %276 }
 0x212   :  { %v273_v28 = vadd.f32 %v272_v21, %v267_v23  ;;  %v278_v29 = vmul.f32 %v1116_v19, %v277_v27  ;;  %v660_v30 = vadd.f32 %v658_v22, %v651_v24  ;;  %v667_v31 = vmul.f32 %v1150_v20, %v277_v27  ;;  %v1125_v22 = vld [vmem:[%s1873_s6 + $0x70] sm:$0xff] }
 0x214   :  { %v279_v35 = vadd.f32 %v278_v29, %v273_v28  ;;  %v1505_v39 = vadd.f32 %v667_v31, %v660_v30  ;;  %v1127_v31 = vld [vmem:[%s1873_s6 + $0x80] sm:$0xff] }
 0x215   :  { %v1507_v40 = vpop.permute.xlu1 %288 }
 0x216   :  { %v290_v41 = vmul.f32 %v1118_v32, %v1507_v40  ;;  %v285_v43 = vadd.f32 %v284_v33, %v279_v35  ;;  %v1128_v35 = vld [vmem:[%s1873_s6 + $0x88] sm:$0xff]  ;;  %s470_s6 = smul.f32 %s1131_s1, %s1419_s13  ;;  %s1656_s13 = sld [smem:[#allocation4 + $0x4]] }
 0x218   :  { %v291_v44 = vadd.f32 %v290_v41, %v285_v43 }
 0x21a   :  { %v293_v45 = vpack.c.bf16 %v291_v44, %v291_v44 }
 0x21c   :  { %v299_v46 = vsel %vm202_vm1, %v293_v45, 0 }
 0x21d   :  { %1223 = vmatpush3.bf16.msra.mxu1 %v299_v46  ;;  %v1570_v46 = vld [vmem:[%s1871_s4] ss:$0 sm:$0xff] }
 0x21e   :  { %1228 = vmatprep.subr.bf16.mxu1 %v1330_v49 }
 0x220   :  { %1225 = vmatmul.mubr.msk.bf16.vlgmr.msra.gmra.mxu1 %vm294_vm3, %v292_v50 }
 0x221   :  { %1230 = vmatprep.mubr.msk.bf16.mxu1 %vm1333_vm2, %v1330_v49 }
 0x2e0   :  { %v335_v51 = vpop.f32.mrf.mxu1 }
 0x2e1   :  { %341 = vadd.xlane.f32.xlu0 %v335_v51  ;;  %v344_v52 = vmul.f32 %v335_v51, %v335_v51 }
 0x2e2   :  { %v1226_v53 = vpop.f32.mrf.mxu1 }
 0x2e3   :  { %345 = vadd.xlane.f32.xlu1 %v344_v52  ;;  %v1575_v53 = vld [vmem:[%s1871_s4 + $0x1] ss:$0 sm:$0xff] }
 0x2e4   :  { %v338_v54 = vpop.f32.mrf.mxu1 }
 0x2e6   :  { %v1227_v55 = vpop.f32.mrf.mxu1 }
 0x36a   :  { %v342_v56 = vpop.xlane.xlu0 %341 }
 0x36b   :  { %v343_v57 = vmul.f32 0.0078125, %v342_v56 }
 0x36c   :  { %v346_v58 = vpop.xlane.xlu1 %345 }
 0x36d   :  { %v348_v59 = vmul.f32 %v343_v57, %v343_v57  ;;  %v347_v60 = vmul.f32 0.0078125, %v346_v58  ;;  %v350_v63 = vsub.f32 %v335_v51, %v343_v57 }
 0x36f   :  { %v349_v61 = vsub.f32 %v347_v60, %v348_v59 }
 0x371   :  { %v351_v62 = vadd.f32 1e-05, %v349_v61 }
 0x373   :  { %1280 = vrsqrt.f32 %v351_v62  ;;  %v1129_v62 = vld [vmem:[%s1874_s7 + $0x4] sm:$0xf]  ;;  %s955_s7 = smul.f32 %s1823_s25, %s1421_s14 }
 0x380   :  { %v1281_v0 = vpop.eup %1280 }
 0x381   :  { %v353_v1 = vmul.f32 %v1281_v0, %v350_v63 }
 0x383   :  { %v354_v2 = vmax.f32 %v353_v1, 0.0 }
 0x385   :  { %366 = vrot.lane.b32.xlu1 %v354_v2, %s1326_s15  ;;  %360 = vrot.lane.b32.xlu0 %v354_v2, %s1327_s16  ;;  %v357_v12 = vmul.f32 %v1120_v7, %v354_v2 }
 0x389   :  { %378 = vrot.lane.b32.xlu1 %v354_v2, %s1331_s19  ;;  %372 = vrot.lane.b32.xlu0 %v354_v2, %s1328_s17 }
 0x38d   :  { %390 = vrot.lane.b32.xlu1 %v354_v2, %s1334_s21  ;;  %384 = vrot.lane.b32.xlu0 %v354_v2, %s1329_s18 }
 0x391   :  { %402 = vrot.lane.b32.xlu1 %v354_v2, %s1335_s0  ;;  %396 = vrot.lane.b32.xlu0 %v354_v2, %s1332_s20 }
 0x395   :  { %212 = vrot.lane.b32.xlu1 %v1430_v42, %s1329_s18  ;;  %204 = vrot.lane.b32.xlu0 %v1430_v42, %s1331_s19 }
 0x3b4   :  { %148 = vadd.xlane.f32.xlu0 %v1532_v4 }
 0x3b8   :  { %152 = vadd.xlane.f32.xlu0 %v1530_v3 }
 0x3b9   :  { %169 = vadd.xlane.f32.xlu1 %v162_v5 }
 0x3bc   :  { %165 = vadd.xlane.f32.xlu0 %v160_v6 }
 0x3f7   :  { %v367_v10 = vpop.permute.xlu1 %366  ;;  %v361_v11 = vpop.permute.xlu0 %360 }
 0x3f8   :  { %v362_v13 = vmul.f32 %v1121_v8, %v361_v11  ;;  %v368_v15 = vmul.f32 %v1122_v9, %v367_v10 }
 0x3fa   :  { %v363_v16 = vadd.f32 %v362_v13, %v357_v12 }
 0x3fb   :  { %v379_v18 = vpop.permute.xlu1 %378  ;;  %v373_v19 = vpop.permute.xlu0 %372 }
 0x3fc   :  { %v369_v20 = vadd.f32 %v368_v15, %v363_v16  ;;  %v374_v21 = vmul.f32 %v1123_v14, %v373_v19  ;;  %v380_v23 = vmul.f32 %v1124_v17, %v379_v18 }
 0x3fe   :  { %v375_v24 = vadd.f32 %v374_v21, %v369_v20 }
 0x3ff   :  { %v391_v27 = vpop.permute.xlu1 %390  ;;  %v385_v28 = vpop.permute.xlu0 %384 }
 0x400   :  { %v381_v29 = vadd.f32 %v380_v23, %v375_v24  ;;  %v386_v30 = vmul.f32 %v1125_v22, %v385_v28  ;;  %v392_v32 = vmul.f32 %v1126_v25, %v391_v27 }
 0x402   :  { %v387_v33 = vadd.f32 %v386_v30, %v381_v29 }
 0x403   :  { %v403_v41 = vpop.permute.xlu1 %402  ;;  %v397_v43 = vpop.permute.xlu0 %396 }
 0x404   :  { %v393_v44 = vadd.f32 %v392_v32, %v387_v33  ;;  %v398_v45 = vmul.f32 %v1127_v31, %v397_v43  ;;  %v404_v50 = vmul.f32 %v1128_v35, %v403_v41  ;;  %v1616_v31 = vld [vmem:[%s1871_s4 + $0x2] ss:$0 sm:$0xff] }
 0x406   :  { %v399_v51 = vadd.f32 %v398_v45, %v393_v44  ;;  %v1622_v44 = vld [vmem:[%s1871_s4 + $0x3] ss:$0 sm:$0xff] }
 0x407   :  { %v213_v52 = vpop.permute.xlu1 %212  ;;  %v205_v54 = vpop.permute.xlu0 %204 }
 0x408   :  { %v405_v55 = vadd.f32 %v404_v50, %v399_v51  ;;  %v210_v56 = vmul.f32 %v1570_v46, %v205_v54  ;;  %v218_v58 = vmul.f32 %v1575_v53, %v213_v52 }
 0x40a   :  { %v408_v57 = vpack.c.bf16 %v405_v55, %v405_v55  ;;  %v211_v59 = vadd.f32 %v210_v56, %v1430_v42  ;;  %v1630_v55 = vld [vmem:[%s1871_s4 + $0x4] ss:$0 sm:$0xff] }
 0x40c   :  { %v413_v60 = vsel %vm202_vm1, %v408_v57, 0  ;;  %v1581_v61 = vadd.f32 %v218_v58, %v211_v59  ;;  %v495_v57 = vstv %s490_s30  ;;  %v477_v58 = vstv %s472_s12  ;;  %s1836_s30 = sld [smem:[#allocation2 + $0x203]] }
 0x40d   :  { %1229 = vmatpush3.bf16.msra.mxu1 %v413_v60  ;;  %v493_v59 = vstv %s488_s11  ;;  %s959_s11 = smul.f32 %s1827_s27, %s1421_s14 }
 0x40e   :  { %1247 = vmatprep.subr.bf16.mxu1 %v1330_v49 }
 0x410   :  { %1231 = vmatmul.mubr.msk.bf16.vlgmr.msra.gmra.mxu1 %vm294_vm3, %v1129_v62 }
 0x411   :  { %1249 = vmatprep.mubr.msk.bf16.mxu1 %vm1333_vm2, %v1330_v49 }
 0x43d   :  { %v149_v63 = vpop.xlane.xlu0 %148 }
 0x43e   :  { %v156_v1 = vmul.f32 0.0078125, %v149_v63  ;;  %v475_v63 = vstv %s470_s6  ;;  %s1831_s6 = sld [smem:[#allocation2 + $0x201]] }
 0x440   :  { %v176_v9 = vmul.f32 %v156_v1, %v156_v1  ;;  %v184_v17 = vsub.f32 %v1532_v4, %v156_v1  ;;  %v498_v1 = vstv %s492_s23 }
 0x441   :  { %v153_v0 = vpop.xlane.xlu0 %152 }
 0x442   :  { %v158_v2 = vmul.f32 0.0078125, %v153_v0  ;;  %v170_v5 = vpop.xlane.xlu1 %169  ;;  %v480_v0 = vstv %s474_s22 }
 0x443   :  { %v174_v6 = vmul.f32 0.0078125, %v170_v5 }
 0x444   :  { %v178_v7 = vmul.f32 %v158_v2, %v158_v2  ;;  %v186_v15 = vsub.f32 %v1530_v3, %v158_v2 }
 0x445   :  { %v166_v8 = vpop.xlane.xlu0 %165 }
 0x446   :  { %v182_v10 = vsub.f32 %v174_v6, %v178_v7  ;;  %v172_v11 = vmul.f32 0.0078125, %v166_v8  ;;  %v494_v6 = vmul.f32 %v493_v59, %v1430_v42  ;;  %v476_v7 = vmul.f32 %v475_v63, %v1430_v42  ;;  %v1153_v59 = vld [vmem:[%s1875_s8 + $0x78] sm:$0xf] }
 0x448   :  { %v190_v12 = vadd.f32 1e-05, %v182_v10  ;;  %v180_v13 = vsub.f32 %v172_v11, %v176_v9 }
 0x44a   :  { %1282 = vrsqrt.f32 %v190_v12  ;;  %v188_v14 = vadd.f32 1e-05, %v180_v13 }
 0x44c   :  { %1284 = vrsqrt.f32 %v188_v14 }
 0x457   :  { %v1283_v16 = vpop.eup %1282 }
 0x458   :  { %v198_v18 = vmul.f32 %v1283_v16, %v186_v15 }
 0x459   :  { %v1285_v19 = vpop.eup %1284 }
 0x45a   :  { %v196_v20 = vmul.f32 %v1285_v19, %v184_v17  ;;  %v503_v22 = vmul.f32 %v501_v34, %v198_v18  ;;  %v988_v24 = vmul.f32 %v986_v38, %v198_v18  ;;  %v1609_v34 = vld [vmem:[%s1872_s5] sm:$0xff]  ;;  %v1649_v17 = vld [vmem:[%s1872_s5 + $0x8] sm:$0xff]  ;;  %v1010_v18 = vstv %s1656_s13 }
 0x45b   :  { %1238 = vmatprep.mubr.msk.f32.mxu0 %vm513_vm4, %v1609_v34 }
 0x45c   :  { %v485_v21 = vmul.f32 %v483_v36, %v196_v20  ;;  %v970_v23 = vmul.f32 %v968_v37, %v196_v20 }
 0x45e   :  { %v509_v25 = vadd.f32 %v503_v22, %v485_v21  ;;  %v1600_v27 = vadd.f32 %v988_v24, %v970_v23  ;;  %v619_v24 = vld [vmem:[%s1875_s8 + $0x8] sm:$0xf] }
 0x460   :  { %1234 = vmatprep.subr.mxu0 %v509_v25 }
 0x461   :  { %1235 = vmatpush3.msra.mxu0 %v509_v25 }
 0x4d0   :  { %v449_v3 = vpop.f32.mrf.mxu1 }
 0x4d1   :  { %455 = vadd.xlane.f32.xlu0 %v449_v3  ;;  %v458_v28 = vmul.f32 %v449_v3, %v449_v3 }
 0x4d2   :  { %v1232_v4 = vpop.f32.mrf.mxu1 }
 0x4d3   :  { %459 = vadd.xlane.f32.xlu1 %v458_v28  ;;  %v1143_v28 = vld [vmem:[%s1875_s8 + $0x18] sm:$0xf] }
 0x4d4   :  { %v452_v29 = vpop.f32.mrf.mxu1 }
 0x4d5   :  { %v1145_v29 = vld [vmem:[%s1875_s8 + $0x28] sm:$0xf] }
 0x4d6   :  { %v1233_v30 = vpop.f32.mrf.mxu1 }
 0x4e4   :  { %228 = vrot.lane.b32.xlu1 %v1581_v61, %s1332_s20 }
 0x4e7   :  { %220 = vrot.lane.b32.xlu0 %v1581_v61, %s1326_s15 }
 0x55a   :  { %v456_v36 = vpop.xlane.xlu0 %455 }
 0x55b   :  { %v457_v37 = vmul.f32 0.0078125, %v456_v36 }
 0x55c   :  { %v460_v38 = vpop.xlane.xlu1 %459 }
 0x55d   :  { %v462_v32 = vmul.f32 %v457_v37, %v457_v37  ;;  %v461_v33 = vmul.f32 0.0078125, %v460_v38  ;;  %v464_v60 = vsub.f32 %v449_v3, %v457_v37 }
 0x55e   :  { %v221_v35 = vpop.permute.xlu0 %220 }
 0x55f   :  { %v463_v41 = vsub.f32 %v461_v33, %v462_v32  ;;  %v226_v43 = vmul.f32 %v1616_v31, %v221_v35  ;;  %v1147_v32 = vld [vmem:[%s1875_s8 + $0x38] sm:$0xf] }
 0x560   :  { %v229_v45 = vpop.permute.xlu1 %228 }
 0x561   :  { %v465_v50 = vadd.f32 1e-05, %v463_v41  ;;  %v227_v51 = vadd.f32 %v226_v43, %v1581_v61  ;;  %v234_v52 = vmul.f32 %v1622_v44, %v229_v45  ;;  %v1149_v41 = vld [vmem:[%s1875_s8 + $0x58] sm:$0xf] }
 0x563   :  { %1286 = vrsqrt.f32 %v465_v50  ;;  %v235_v54 = vadd.f32 %v234_v52, %v227_v51  ;;  %v1152_v51 = vld [vmem:[%s1875_s8 + $0x70] sm:$0xff]  ;;  %v1151_v52 = vld [vmem:[%s1875_s8 + $0x68] sm:$0xf] }
 0x565   :  { %v1636_v56 = vmul.f32 %v1630_v55, %v235_v54 }
 0x567   :  { %v496_v61 = vmul.f32 %v495_v57, %v1636_v56  ;;  %v478_v5 = vmul.f32 %v477_v58, %v1636_v56  ;;  %v1154_v58 = vld [vmem:[%s1875_s8 + $0x80] sm:$0xff] }
 0x569   :  { %v497_v9 = vadd.f32 %v496_v61, %v494_v6  ;;  %v479_v11 = vadd.f32 %v478_v5, %v476_v7  ;;  %v685_v5 = vmul.f32 %v1154_v58, %v1507_v40 }
 0x570   :  { %v1287_v62 = vpop.eup %1286 }
 0x571   :  { %v467_v2 = vmul.f32 %v1287_v62, %v464_v60  ;;  %v676_v62 = vmul.f32 %v1152_v51, %v1499_v26 }
 0x573   :  { %v481_v8 = vmul.f32 %v480_v0, %v467_v2  ;;  %v499_v10 = vmul.f32 %v498_v1, %v467_v2  ;;  %v1155_v1 = vld [vmem:[%s1875_s8 + $0x88] sm:$0xf]  ;;  %v678_v2 = vadd.f32 %v676_v62, %v1505_v39 }
 0x575   :  { %v500_v12 = vadd.f32 %v499_v10, %v497_v9  ;;  %v482_v13 = vadd.f32 %v481_v8, %v479_v11  ;;  %v687_v11 = vadd.f32 %v685_v5, %v678_v2  ;;  %v1162_v5 = vld [vmem:[%s1875_s8 + $0xa0] sm:$0xff] }
 0x577   :  { %v505_v14 = vrot.slane %v500_v12, 4 }
 0x579   :  { %v507_v15 = vadd.f32 %v505_v14, %v482_v13  ;;  %v1274_v14 = vld [vmem:[%s1876_s9] sm:$0x3f]  }
 0x57b   :  { %v510_v16 = vsel %vm202_vm1, %v507_v15, %v1439_v47 }
 0x57c   :  { %1236 = vmatprep.subr.mxu0 %v510_v16 }
 0x57d   :  { %1237 = vmatpush3.msra.mxu0 %v510_v16 }
 0x57e   :  { %1239 = vmatmul.mubr.msk.f32.vlgmr.msra.gmra.mxu0 %vm513_vm4, %v1649_v17  ;;  %1241 = vmatprep.subr.bf16.mxu0 %v1330_v49 }
 0x57f   :  { %1243 = vmatprep.mubr.msk.bf16.mxu0 %vm1333_vm2, %v1330_v49 }
 0x63e   :  { %v1240_v47 = vpop.f32.mrf.mxu0 }
 0x63f   :  { %v1012_v19 = vmul.f32 %v1240_v47, %v1010_v18  ;;  %1093 = vst [vmem:[%s1877_s10 + $0x8] sm:$0xff] %v1240_v47 }
 0x640   :  { %v1662_v20 = vpop.f32.mrf.mxu0 }
 0x641   :  { %v1015_v21 = vadd.f32 %v1012_v19, %v1600_v27  ;;  %v612_v22 = vmax.f32 %v1662_v20, 0.0  ;;  %1092 = vst [vmem:[%s1877_s10] sm:$0xff] %v1662_v20  ;;  %v1011_v49 = vmul.f32 %v1010_v18, %v1662_v20 }
 0x643   :  { %638 = vrot.lane.b32.xlu0 %v612_v22, %s1328_s17  ;;  %620 = vrot.lane.b32.xlu1 %v612_v22, %s1327_s16  ;;  %v1674_v23 = vadd.f32 %v1011_v49, %v1441_v48  ;;  %v1141_v48 = vld [vmem:[%s1875_s8 + $0x48] sm:$0xf] }
 0x644   :  { %v617_v4 = vmul.f32 %v1141_v48, %v612_v22 }
 0x647   :  { %656 = vrot.lane.b32.xlu0 %v612_v22, %s1329_s18  ;;  %629 = vrot.lane.b32.xlu1 %v612_v22, %s1326_s15 }
 0x64b   :  { %674 = vrot.lane.b32.xlu0 %v612_v22, %s1332_s20  ;;  %647 = vrot.lane.b32.xlu1 %v612_v22, %s1331_s19 }
 0x64f   :  { %665 = vrot.lane.b32.xlu1 %v612_v22, %s1334_s21 }
 0x653   :  { %683 = vrot.lane.b32.xlu1 %v612_v22, %s1335_s0 }
 0x6b5   :  { %v639_v25 = vpop.permute.xlu0 %638  ;;  %v621_v27 = vpop.permute.xlu1 %620 }
 0x6b6   :  { %v623_v3 = vmul.f32 %v621_v27, %v619_v24  ;;  %v641_v33 = vmul.f32 %v1145_v29, %v639_v25 }
 0x6b8   :  { %v625_v36 = vadd.f32 %v623_v3, %v617_v4 }
 0x6b9   :  { %v630_v30 = vpop.permute.xlu1 %629  ;;  %v657_v38 = vpop.permute.xlu0 %656 }
 0x6ba   :  { %v632_v37 = vmul.f32 %v1143_v28, %v630_v30  ;;  %v659_v54 = vmul.f32 %v1149_v41, %v657_v38 }
 0x6bc   :  { %v634_v35 = vadd.f32 %v632_v37, %v625_v36 }
 0x6bd   :  { %v648_v43 = vpop.permute.xlu1 %647  ;;  %v675_v60 = vpop.permute.xlu0 %674 }
 0x6be   :  { %v643_v45 = vadd.f32 %v641_v33, %v634_v35  ;;  %v650_v50 = vmul.f32 %v1147_v32, %v648_v43  ;;  %v677_v6 = vmul.f32 %v1153_v59, %v675_v60  ;;  %v1160_v60 = vld [vmem:[%s1875_s8 + $0x90] sm:$0xff] }
 0x6c0   :  { %v652_v57 = vadd.f32 %v650_v50, %v643_v45 }
 0x6c1   :  { %v666_v61 = vpop.permute.xlu1 %665 }
 0x6c2   :  { %v661_v63 = vadd.f32 %v659_v54, %v652_v57  ;;  %v668_v0 = vmul.f32 %v1151_v52, %v666_v61  ;;  %v1158_v61 = vld [vmem:[%s1875_s8 + $0xd0] sm:$0xff] }
 0x6c4   :  { %v670_v7 = vadd.f32 %v668_v0, %v661_v63 }
 0x6c5   :  { %v684_v8 = vpop.permute.xlu1 %683 }
 0x6c6   :  { %v679_v9 = vadd.f32 %v677_v6, %v670_v7  ;;  %v686_v10 = vmul.f32 %v1155_v1, %v684_v8  ;;  %v1161_v1 = vld [vmem:[%s1875_s8 + $0x98] sm:$0xf]  ;;  %v1163_v7 = vld [vmem:[%s1875_s8 + $0xa8] sm:$0xf] }
 0x6c7   :  { %v1159_v6 = vld [vmem:[%s1875_s8 + $0xd8] sm:$0xf] }
 0x6c8   :  { %v688_v12 = vadd.f32 %v686_v10, %v679_v9 }
 0x6ca   :  { %v691_v13 = vpack.c.bf16 %v688_v12, %v687_v11  ;;  %v1164_v12 = vld [vmem:[%s1875_s8 + $0xb0] sm:$0xff] }
 0x6cc   :  { %v703_v26 = vsel %vm701_vm5, %v691_v13, 0  ;;  %v1165_v13 = vld [vmem:[%s1875_s8 + $0xb8] sm:$0xf] }
 0x6cd   :  { %1242 = vmatpush3.bf16.msra.mxu0 %v703_v26 }
 0x6ce   :  { %1253 = vmatprep.subr.mxu0 %v1015_v21 }
 0x6d0   :  { %1244 = vmatmul.mubr.msk.bf16.vlgmr.msra.gmra.mxu0 %vm697_vm6, %v1274_v14 }
 0x6d1   :  { %1254 = vmatpush3.msra.mxu0 %v1015_v21  ;;  %1257 = vmatprep.mubr.msk.f32.mxu0 %vm513_vm4, %v1609_v34 }
 0x790   :  { %v739_v39 = vpop.f32.mrf.mxu0 }
 0x791   :  { %746 = vadd.xlane.f32.xlu0 %v739_v39  ;;  %v753_v15 = vmul.f32 %v739_v39, %v739_v39 }
 0x792   :  { %v1245_v40 = vpop.f32.mrf.mxu0 }
 0x793   :  { %v1166_v40 = vld [vmem:[%s1875_s8 + $0xc0] sm:$0xff] }
 0x794   :  { %v742_v16 = vpop.f32.mrf.mxu0 }
 0x795   :  { %755 = vadd.xlane.f32.xlu0 %v753_v15  ;;  %v748_v18 = vsel %vm202_vm1, %v742_v16, 0.0  ;;  %v754_v47 = vmul.f32 %v742_v16, %v742_v16  ;;  %v1167_v15 = vld [vmem:[%s1875_s8 + $0xc8] sm:$0xf] }
 0x796   :  { %749 = vadd.xlane.f32.xlu1 %v748_v18  ;;  %v1246_v19 = vpop.f32.mrf.mxu0 }
 0x797   :  { %v757_v22 = vsel %vm202_vm1, %v754_v47, 0.0 }
 0x799   :  { %758 = vadd.xlane.f32.xlu0 %v757_v22 }
 0x81a   :  { %v747_v49 = vpop.xlane.xlu0 %746 }
 0x81b   :  { %v751_v24 = vmul.f32 0.0078125, %v747_v49  ;;  %v1168_v49 = vld [vmem:[%s1875_s8 + $0xe0] sm:$0xff] }
 0x81d   :  { %v762_v25 = vmul.f32 %v751_v24, %v751_v24  ;;  %v766_v38 = vsub.f32 %v739_v39, %v751_v24 }
 0x81e   :  { %v756_v21 = vpop.xlane.xlu0 %755 }
 0x81f   :  { %v760_v48 = vmul.f32 0.0078125, %v756_v21  ;;  %v750_v34 = vpop.xlane.xlu1 %749  ;;  %v1169_v21 = vld [vmem:[%s1875_s8 + $0xe8] sm:$0xf] }
 0x820   :  { %v752_v27 = vmul.f32 0.0078125, %v750_v34 }
 0x821   :  { %v764_v3 = vsub.f32 %v760_v48, %v762_v25 }
 0x822   :  { %v763_v28 = vmul.f32 %v752_v27, %v752_v27  ;;  %v759_v4 = vpop.xlane.xlu0 %758  ;;  %v767_v41 = vsub.f32 %v742_v16, %v752_v27  ;;  %v1170_v27 = vld [vmem:[%s1875_s8 + $0xf0] sm:$0xff] }
 0x823   :  { %v768_v29 = vadd.f32 1e-05, %v764_v3  ;;  %v761_v30 = vmul.f32 0.0078125, %v759_v4  ;;  %v1171_v3 = vld [vmem:[%s1875_s8 + $0xf8] sm:$0xf] }
 0x825   :  { %1288 = vrsqrt.f32 %v768_v29  ;;  %v765_v36 = vsub.f32 %v761_v30, %v763_v28 }
 0x827   :  { %v769_v37 = vadd.f32 1e-05, %v765_v36 }
 0x829   :  { %1290 = vrsqrt.f32 %v769_v37  ;;  %v1172_v37 = vld [vmem:[%s1875_s8 + $0x100] sm:$0xff] }
 0x832   :  { %v1289_v32 = vpop.eup %1288 }
 0x833   :  { %v772_v33 = vmul.f32 %v1289_v32, %v766_v38  ;;  %v1173_v38 = vld [vmem:[%s1875_s8 + $0x108] sm:$0xf] }
 0x835   :  { %v774_v35 = vmax.f32 %v772_v33, 0.0 }
 0x836   :  { %v1291_v43 = vpop.eup %1290 }
 0x837   :  { %v773_v45 = vmul.f32 %v1291_v43, %v767_v41  ;;  %784 = vrot.lane.b32.xlu0 %v774_v35, %s1327_s16  ;;  %795 = vrot.lane.b32.xlu1 %v774_v35, %s1326_s15  ;;  %v779_v2 = vmul.f32 %v1158_v61, %v774_v35  ;;  %v1174_v43 = vld [vmem:[%s1875_s8 + $0x110] sm:$0xff] }
 0x839   :  { %v775_v50 = vmax.f32 %v773_v45, 0.0 }
 0x83b   :  { %806 = vrot.lane.b32.xlu0 %v774_v35, %s1328_s17  ;;  %786 = vrot.lane.b32.xlu1 %v775_v50, %s1327_s16  ;;  %v780_v14 = vmul.f32 %v1159_v6, %v775_v50 }
 0x83f   :  { %817 = vrot.lane.b32.xlu0 %v774_v35, %s1331_s19  ;;  %797 = vrot.lane.b32.xlu1 %v775_v50, %s1326_s15 }
 0x843   :  { %828 = vrot.lane.b32.xlu0 %v774_v35, %s1329_s18  ;;  %808 = vrot.lane.b32.xlu1 %v775_v50, %s1328_s17 }
 0x847   :  { %839 = vrot.lane.b32.xlu0 %v774_v35, %s1334_s21  ;;  %819 = vrot.lane.b32.xlu1 %v775_v50, %s1331_s19 }
 0x84b   :  { %850 = vrot.lane.b32.xlu0 %v774_v35, %s1332_s20  ;;  %830 = vrot.lane.b32.xlu1 %v775_v50, %s1329_s18 }
 0x84f   :  { %861 = vrot.lane.b32.xlu0 %v774_v35, %s1335_s0  ;;  %841 = vrot.lane.b32.xlu1 %v775_v50, %s1334_s21  ;;  %s999_s21 = smul.f32 %s1825_s26, %s1656_s13 }
 0x853   :  { %595 = vrot.lane.b32.xlu0 %v1662_v20, %s1331_s19  ;;  %852 = vrot.lane.b32.xlu1 %v775_v50, %s1332_s20  ;;  %s997_s19 = smul.f32 %s1831_s6, %s1656_s13 }
 0x857   :  { %863 = vrot.lane.b32.xlu1 %v775_v50, %s1335_s0 }
 0x85b   :  { %599 = vrot.lane.b32.xlu1 %v1662_v20, %s1329_s18 }
 0x8a9   :  { %v785_v51 = vpop.permute.xlu0 %784  ;;  %v796_v52 = vpop.permute.xlu1 %795 }
 0x8aa   :  { %v788_v0 = vmul.f32 %v1160_v60, %v785_v51  ;;  %v799_v26 = vmul.f32 %v1162_v5, %v796_v52 }
 0x8ac   :  { %v790_v10 = vadd.f32 %v788_v0, %v779_v2 }
 0x8ad   :  { %v807_v54 = vpop.permute.xlu0 %806  ;;  %v787_v57 = vpop.permute.xlu1 %786 }
 0x8ae   :  { %v789_v11 = vmul.f32 %v1161_v1, %v787_v57  ;;  %v801_v18 = vadd.f32 %v799_v26, %v790_v10  ;;  %v810_v47 = vmul.f32 %v1164_v12, %v807_v54 }
 0x8b0   :  { %v791_v19 = vadd.f32 %v789_v11, %v780_v14  ;;  %v812_v4 = vadd.f32 %v810_v47, %v801_v18 }
 0x8b1   :  { %v818_v58 = vpop.permute.xlu0 %817  ;;  %v798_v59 = vpop.permute.xlu1 %797 }
 0x8b2   :  { %v800_v39 = vmul.f32 %v1163_v7, %v798_v59  ;;  %v821_v25 = vmul.f32 %v1166_v40, %v818_v58  ;;  %v1175_v58 = vld [vmem:[%s1875_s8 + $0x118] sm:$0xf]  ;;  %s1186_s8 = sld [smem:[#allocation2 + $0x182]] }
 0x8b4   :  { %v802_v48 = vadd.f32 %v800_v39, %v791_v19  ;;  %v823_v32 = vadd.f32 %v821_v25, %v812_v4 }
 0x8b5   :  { %v829_v62 = vpop.permute.xlu0 %828  ;;  %v809_v63 = vpop.permute.xlu1 %808 }
 0x8b6   :  { %v811_v22 = vmul.f32 %v1165_v13, %v809_v63  ;;  %v832_v29 = vmul.f32 %v1168_v49, %v829_v62 }
 0x8b8   :  { %v813_v30 = vadd.f32 %v811_v22, %v802_v48  ;;  %v834_v51 = vadd.f32 %v832_v29, %v823_v32  ;;  %s975_s28 = smul.f32 %s1186_s8, %s1417_s3 }
 0x8b9   :  { %v840_v8 = vpop.permute.xlu0 %839  ;;  %v820_v9 = vpop.permute.xlu1 %819 }
 0x8ba   :  { %v822_v34 = vmul.f32 %v1167_v15, %v820_v9  ;;  %v843_v33 = vmul.f32 %v1170_v27, %v840_v8  ;;  %v1275_v8 = vld [vmem:[%s1876_s9 + $0x8] sm:$0x3f]   ;;  %s1185_s9 = sld [smem:[#allocation2 + $0x181]]  ;;  %v980_v32 = vstv %s975_s28 }
 0x8bc   :  { %v824_v35 = vadd.f32 %v822_v34, %v813_v30  ;;  %v845_v59 = vadd.f32 %v843_v33, %v834_v51 }
 0x8bd   :  { %v831_v16 = vpop.permute.xlu1 %830  ;;  %v851_v24 = vpop.permute.xlu0 %850 }
 0x8be   :  { %v833_v36 = vmul.f32 %v1169_v21, %v831_v16  ;;  %v854_v52 = vmul.f32 %v1172_v37, %v851_v24 }
 0x8c0   :  { %v835_v54 = vadd.f32 %v833_v36, %v824_v35  ;;  %v856_v63 = vadd.f32 %v854_v52, %v845_v59  ;;  %s973_s29 = smul.f32 %s1185_s9, %s1417_s3  ;;  %v965_v59 = vstv %s959_s11 }
 0x8c1   :  { %v842_v28 = vpop.permute.xlu1 %841  ;;  %v862_v45 = vpop.permute.xlu0 %861 }
 0x8c2   :  { %v844_v41 = vmul.f32 %v1171_v3, %v842_v28  ;;  %v865_v60 = vmul.f32 %v1174_v43, %v862_v45  ;;  %v978_v35 = vstv %s973_s29 }
 0x8c4   :  { %v846_v61 = vadd.f32 %v844_v41, %v835_v54  ;;  %v867_v2 = vadd.f32 %v865_v60, %v856_v63  ;;  %v981_v41 = vmul.f32 %v980_v32, %v1636_v56  ;;  %v979_v54 = vmul.f32 %v978_v35, %v1430_v42 }
 0x8c5   :  { %v853_v50 = vpop.permute.xlu1 %852  ;;  %v596_v39 = vpop.permute.xlu0 %595 }
 0x8c6   :  { %v855_v57 = vmul.f32 %v1173_v38, %v853_v50  ;;  %v597_v16 = vmul.f32 %v1570_v46, %v596_v39  ;;  %v982_v60 = vadd.f32 %v981_v41, %v979_v54 }
 0x8c8   :  { %v857_v0 = vadd.f32 %v855_v57, %v846_v61  ;;  %v598_v47 = vadd.f32 %v597_v16, %v1662_v20  ;;  %v960_v57 = vstv %s955_s7 }
 0x8c9   :  { %v864_v62 = vpop.permute.xlu1 %863 }
 0x8ca   :  { %v866_v1 = vmul.f32 %v1175_v58, %v864_v62  ;;  %v1004_v58 = vstv %s999_s21 }
 0x8cc   :  { %v868_v5 = vadd.f32 %v866_v1, %v857_v0  ;;  %v1002_v0 = vstv %s997_s19 }
 0x8cd   :  { %v600_v15 = vpop.permute.xlu1 %599 }
 0x8ce   :  { %v872_v6 = vpack.c.bf16 %v868_v5, %v867_v2  ;;  %v601_v18 = vmul.f32 %v1575_v53, %v600_v15  ;;  %v961_v5 = vmul.f32 %v960_v57, %v1430_v42 }
 0x8d0   :  { %v882_v7 = vsel %vm701_vm5, %v872_v6, 0  ;;  %v602_v19 = vadd.f32 %v601_v18, %v598_v47 }
 0x8d1   :  { %1248 = vmatpush3.bf16.msra.mxu1 %v882_v7 }
 0x8d4   :  { %1250 = vmatmul.mubr.msk.bf16.vlgmr.msra.gmra.mxu1 %vm697_vm6, %v1275_v8 }
 0x994   :  { %v1806_v9 = vpop.f32.mrf.mxu1 }
 0x995   :  { %925 = vadd.xlane.f32.xlu0 %v1806_v9  ;;  %v932_v10 = vmul.f32 %v1806_v9, %v1806_v9 }
 0x996   :  { %v1251_v11 = vpop.f32.mrf.mxu1 }
 0x997   :  { %934 = vadd.xlane.f32.xlu1 %v932_v10  ;;  %v1003_v11 = vmul.f32 %v1002_v0, %v1662_v20 }
 0x998   :  { %v1811_v12 = vpop.f32.mrf.mxu1 }
 0x999   :  { %v927_v13 = vsel %vm202_vm1, %v1811_v12, 0.0  ;;  %v933_v26 = vmul.f32 %v1811_v12, %v1811_v12 }
 0x99a   :  { %928 = vadd.xlane.f32.xlu0 %v927_v13  ;;  %v1252_v14 = vpop.f32.mrf.mxu1 }
 0x99b   :  { %v936_v40 = vsel %vm202_vm1, %v933_v26, 0.0 }
 0x99e   :  { %937 = vadd.xlane.f32.xlu0 %v936_v40 }
 0x9a8   :  { %607 = vrot.lane.b32.xlu1 %v602_v19, %s1332_s20  ;;  %s1182_s20 = sld [smem:[#allocation2 + $0x102]] }
 0x9ae   :  { %s957_s17 = smul.f32 %s1182_s20, %s1421_s14 }
 0x9b0   :  { %v962_v51 = vstv %s957_s17 }
 0x9b1   :  { %v963_v62 = vmul.f32 %v962_v51, %v1636_v56 }
 0x9b4   :  { %603 = vrot.lane.b32.xlu0 %v602_v19, %s1326_s15  ;;  %s1187_s15 = sld [smem:[#allocation2 + $0x183]] }
 0x9ba   :  { %s977_s16 = smul.f32 %s1187_s15, %s1417_s3 }
 0x9bb   :  { %s1001_s3 = smul.f32 %s1836_s30, %s1656_s13 }
 0x9bc   :  { %v983_v50 = vstv %s977_s16 }
 0x9bd   :  { %v1007_v8 = vstv %s1001_s3 }
 0xa1e   :  { %v926_v22 = vpop.xlane.xlu0 %925 }
 0xa1f   :  { %v930_v49 = vmul.f32 0.0078125, %v926_v22 }
 0xa20   :  { %v935_v24 = vpop.xlane.xlu1 %934 }
 0xa21   :  { %v941_v21 = vmul.f32 %v930_v49, %v930_v49  ;;  %v939_v25 = vmul.f32 0.0078125, %v935_v24  ;;  %v945_v43 = vsub.f32 %v1806_v9, %v930_v49 }
 0xa23   :  { %v943_v48 = vsub.f32 %v939_v25, %v941_v21  ;;  %v929_v34 = vpop.xlane.xlu0 %928 }
 0xa24   :  { %v931_v27 = vmul.f32 0.0078125, %v929_v34  ;;  %v608_v37 = vpop.permute.xlu1 %607 }
 0xa25   :  { %v947_v46 = vadd.f32 1e-05, %v943_v48  ;;  %v609_v33 = vmul.f32 %v1622_v44, %v608_v37 }
 0xa26   :  { %v942_v3 = vmul.f32 %v931_v27, %v931_v27  ;;  %v946_v1 = vsub.f32 %v1811_v12, %v931_v27 }
 0xa27   :  { %1292 = vrsqrt.f32 %v947_v46  ;;  %v938_v53 = vpop.xlane.xlu0 %937 }
 0xa28   :  { %v940_v28 = vmul.f32 0.0078125, %v938_v53 }
 0xa2a   :  { %v944_v4 = vsub.f32 %v940_v28, %v942_v3 }
 0xa2b   :  { %v604_v29 = vpop.permute.xlu0 %603 }
 0xa2c   :  { %v948_v30 = vadd.f32 1e-05, %v944_v4  ;;  %v605_v36 = vmul.f32 %v1616_v31, %v604_v29 }
 0xa2e   :  { %1294 = vrsqrt.f32 %v948_v30  ;;  %v606_v38 = vadd.f32 %v605_v36, %v602_v19 }
 0xa30   :  { %v610_v31 = vadd.f32 %v609_v33, %v606_v38 }
 0xa32   :  { %v611_v44 = vmul.f32 %v1630_v55, %v610_v31  ;;  %v964_v55 = vadd.f32 %v963_v62, %v961_v5 }
 0xa34   :  { %v1293_v45 = vpop.eup %1292  ;;  %v1005_v2 = vmul.f32 %v1004_v58, %v611_v44 }
 0xa35   :  { %v951_v52 = vmul.f32 %v1293_v45, %v945_v43 }
 0xa36   :  { %v1006_v26 = vadd.f32 %v1005_v2, %v1003_v11 }
 0xa37   :  { %v984_v61 = vmul.f32 %v983_v50, %v951_v52  ;;  %v966_v6 = vmul.f32 %v965_v59, %v951_v52 }
 0xa39   :  { %v985_v63 = vadd.f32 %v984_v61, %v982_v60  ;;  %v967_v13 = vadd.f32 %v966_v6, %v964_v55 }
 0xa3b   :  { %v1295_v7 = vpop.eup %1294  ;;  %v990_v10 = vrot.slane %v985_v63, 4 }
 0xa3c   :  { %v952_v9 = vmul.f32 %v1295_v7, %v946_v1 }
 0xa3d   :  { %v992_v39 = vadd.f32 %v990_v10, %v967_v13 }
 0xa3e   :  { %v1008_v14 = vmul.f32 %v1007_v8, %v952_v9 }
 0xa40   :  { %v1009_v56 = vadd.f32 %v1008_v14, %v1006_v26 }
 0xa42   :  { %v1013_v40 = vadd.f32 %v1009_v56, %v992_v39 }
 0xa44   :  { %v1016_v12 = vsel %vm202_vm1, %v1013_v40, %v1674_v23 }
 0xa45   :  { %1255 = vmatprep.subr.mxu0 %v1016_v12 }
 0xa46   :  { %1256 = vmatpush3.msra.mxu0 %v1016_v12 }
 0xa47   :  { %1258 = vmatmul.mubr.msk.f32.vlgmr.msra.gmra.mxu0 %vm513_vm4, %v1649_v17 }
 0xb07   :  { %v1259_v42 = vpop.f32.mrf.mxu0 }
 0xb08   :  { %1095 = vst [vmem:[%s1877_s10 + $0x18] sm:$0xff] %v1259_v42 }
 0xb09   :  { %v1083_v20 = vpop.f32.mrf.mxu0 }
 0xb0a   :  { %1094 = vst [vmem:[%s1877_s10 + $0x10] sm:$0xff] %v1083_v20 }
 0xb0b   :  { %1100 = vsyncpa [#allocation3], 1 }
 0xb0c   :  { %1101 = vsyncpa [#allocation5], 1 }

</bundles_post_ra>
